<compile_context>
chip_gen: v7x
topology: tpu7x:2x2x1
jax: 0.10.0
libtpu: 0.0.40
codegen_flags: <defaults>
</compile_context>

<pallas_src>
import jax
import jax.numpy as jnp
from jax.experimental import pallas as pl
from jax.experimental.pallas import tpu as pltpu


# ============================== Pallas kernel ===============================

def pse_tempcnn_kernel(pix_ref, mask_ref, extra_ref,
                       w1a_ref, b1a_ref, w1b_ref, b1b_ref,
                       w2m_ref, w2s_ref, w2e_ref, b2_ref,
                       cw1_ref, cb1_ref, cw2_ref, cb2_ref, cw3_ref, cb3_ref,
                       fw1_ref, fb1_ref, fw2_ref, fb2_ref,
                       dw1_ref, db1_ref, dw2_ref, db2_ref, dw3_ref, db3_ref,
                       out_ref):
    """Fused PSE + TempCNN + decoder for one block of Bb batch elements.

    pix_ref   : (Bb*T*S, C)   pixel sets, channels-last, pre-flattened
    mask_ref  : (Bb*T, S)     valid-pixel masks
    extra_ref : (Bb*T, E)     extra per-(batch, time) features
    out_ref   : (1, Bb, Cpad) lane-padded logits (sliced in the wrapper)
    """
    _, Bb, _ = out_ref.shape
    N, S = mask_ref.shape                       # N = Bb * T
    T = N // Bb

    def mm(a, w_ref):
        # bf16 MXU matmul with f32 accumulation.
        return jnp.dot(a.astype(jnp.bfloat16), w_ref[...],
                       preferred_element_type=jnp.float32)

    # ------------------------- Pixel-Set encoder ---------------------------
    # mlp1: shared pixel-wise MLP (Linear + folded BN + ReLU) x2 on all rows.
    h = jnp.maximum(mm(pix_ref[...], w1a_ref) + b1a_ref[...], 0.0)
    h = jnp.maximum(mm(h, w1b_ref) + b1b_ref[...], 0.0)       # (N*S, D1)
    D1 = h.shape[-1]
    h = h.reshape(N, S, D1)

    # 'mean_std' masked pooling over pixels (masked_mean / masked_std), f32.
    mvals = mask_ref[...]                                      # (N, S)
    m = mvals[:, :, None]                                      # (N, S, 1)
    msum = jnp.sum(mvals, axis=1, keepdims=True)               # (N, 1)
    mean = jnp.sum(h * m, axis=1) / msum                       # (N, D1)
    diff = (h - mean[:, None, :]) * m
    denom = jnp.where(msum == 1.0, 2.0, msum) - 1.0            # d[d==1]=2 ; d-1
    std = jnp.sqrt(jnp.sum(diff * diff, axis=1) / denom + 1e-31)

    # mlp2: split mean/std/extra matmuls (no lane concat), extra term in-kernel.
    feats = jnp.maximum(mm(mean, w2m_ref) + mm(std, w2s_ref)
                        + mm(extra_ref[...], w2e_ref) + b2_ref[...], 0.0)

    # --------------------------- TempCNN stack -----------------------------
    # Within-sequence time index of every row: zeroes any tap that falls off a
    # sequence edge (also kills cyclic wrap and cross-sample leakage in the
    # flattened (Bb*T) layout).
    t_idx = jax.lax.broadcasted_iota(jnp.int32, (N, 1), 0) % T
    has_left = t_idx != 0
    has_right = t_idx != (T - 1)

    def conv_k3(x, w_ref, b_ref):
        # Conv1d(k=3, padding=1) + folded BN + ReLU as ONE matmul:
        # [x[t-1] | x[t] | x[t+1]] @ (3*Cin, Cout).
        left = jnp.where(has_left, jnp.roll(x, 1, axis=0), 0.0)
        right = jnp.where(has_right, jnp.roll(x, -1, axis=0), 0.0)
        taps = jnp.concatenate([left, x, right], axis=-1)      # (N, 3*Cin)
        return jnp.maximum(mm(taps, w_ref) + b_ref[...], 0.0)

    h = conv_k3(feats, cw1_ref, cb1_ref)                       # (N, 32)
    h = conv_k3(h, cw2_ref, cb2_ref)                           # (N, 32)
    h = conv_k3(h, cw3_ref, cb3_ref)                           # (N, C3)
    C3 = h.shape[-1]

    # Time-major flatten (Bb, T, C3) -> (Bb, T*C3) via in-register lane concat
    # (each slice is already 128-lane aligned; no VMEM scratch round trip).
    h3 = h.reshape(Bb, T, C3)
    g = jnp.concatenate([h3[:, t, :] for t in range(T)], axis=-1)

    # FC head (Linear + folded BN + ReLU) x2
    g = jnp.maximum(mm(g, fw1_ref) + fb1_ref[...], 0.0)
    g = jnp.maximum(mm(g, fw2_ref) + fb2_ref[...], 0.0)

    # Decoder MLP: Linear+BN+ReLU, Linear+BN+ReLU, Linear (class dim padded).
    g = jnp.maximum(mm(g, dw1_ref) + db1_ref[...], 0.0)
    g = jnp.maximum(mm(g, dw2_ref) + db2_ref[...], 0.0)
    logits = mm(g, dw3_ref) + db3_ref[...]                     # (Bb, Cpad)
    out_ref[...] = logits.reshape(out_ref.shape)


# ================================ Wrapper ===================================

def _const_spec(arr):
    zeros = (0,) * arr.ndim
    return pl.BlockSpec(arr.shape, lambda *_: zeros)


def pse_tempcnn_forward(params, pixels, mask, positions, extra, n_classes):
    # TODO(synk): `positions` / max_position / max_temporal_shift are accepted
    # for interface parity but are unused by the TempCNN temporal-encoder.
    del positions
    B, T, C, S = pixels.shape
    E = extra.shape[-1]
    D1 = params["w1b"].shape[-1]

    # Layouts: pixels (B*T*S, C) channels-last, mask (B*T, S), extra (B*T, E).
    pix = jnp.transpose(pixels, (0, 1, 3, 2)).reshape(B * T * S, C).astype(jnp.float32)
    msk = mask.reshape(B * T, S).astype(jnp.float32)
    ext = extra.reshape(B * T, E).astype(jnp.float32)

    # Batch block size: >= 2 grid steps whenever B >= 2 (v7x: 2 TensorCores
    # shard the "parallel" axis), growing up to 8 batch elements per step.
    Bb = B if B <= 1 else min(8, -(-B // 2))
    G = -(-B // Bb)
    Bp = G * Bb
    if Bp != B:
        padb = Bp - B
        pix = jnp.pad(pix, ((0, padb * T * S), (0, 0)))
        msk = jnp.pad(msk, ((0, padb * T), (0, 0)), constant_values=1.0)
        ext = jnp.pad(ext, ((0, padb * T), (0, 0)))

    # Lane-dense padded logits (unmasked stores); slice back after the call.
    c_pad = 128 * -(-n_classes // 128)

    bf16 = lambda a: a.astype(jnp.bfloat16)
    w2ms = params["w2ms"]
    weights = (
        bf16(params["w1a"]), params["b1a"], bf16(params["w1b"]), params["b1b"],
        bf16(w2ms[:D1]), bf16(w2ms[D1:]), bf16(params["w2e"]), params["b2"],
        bf16(params["cw1"].reshape(-1, params["cw1"].shape[-1])), params["cb1"],
        bf16(params["cw2"].reshape(-1, params["cw2"].shape[-1])), params["cb2"],
        bf16(params["cw3"].reshape(-1, params["cw3"].shape[-1])), params["cb3"],
        bf16(params["fw1"]), params["fb1"], bf16(params["fw2"]), params["fb2"],
        bf16(params["dw1"]), params["db1"], bf16(params["dw2"]), params["db2"],
        bf16(jnp.pad(params["dw3"], ((0, 0), (0, c_pad - n_classes)))),
        jnp.pad(params["db3"], ((0, 0), (0, c_pad - n_classes))),
    )

    out = pl.pallas_call(
        pse_tempcnn_kernel,
        grid=(G,),
        in_specs=[pl.BlockSpec((Bb * T * S, C), lambda b: (b, 0)),
                  pl.BlockSpec((Bb * T, S), lambda b: (b, 0)),
                  pl.BlockSpec((Bb * T, E), lambda b: (b, 0))]
                 + [_const_spec(w) for w in weights],
        out_specs=pl.BlockSpec((1, Bb, c_pad), lambda b: (b, 0, 0)),
        out_shape=jax.ShapeDtypeStruct((G, Bb, c_pad), jnp.float32),
        compiler_params=pltpu.CompilerParams(dimension_semantics=("parallel",)),
    )(pix, msk, ext, *weights)
    return out.reshape(Bp, c_pad)[:B, :n_classes]


# ======================= Deterministic parameter init =======================

def _lin(key, fan_in, fan_out):
    kw, kb = jax.random.split(key)
    w = jax.random.normal(kw, (fan_in, fan_out), jnp.float32) / jnp.sqrt(float(fan_in))
    b = 0.01 * jax.random.normal(kb, (1, fan_out), jnp.float32)
    return w, b


def _bn(key, dim, eps=1e-5):
    # eval-mode BN with freshly-initialised running stats (mean=0, var=1)
    kg, kb = jax.random.split(key)
    gamma = 1.0 + 0.1 * jax.random.normal(kg, (dim,), jnp.float32)
    beta = 0.05 * jax.random.normal(kb, (dim,), jnp.float32)
    scale = gamma / jnp.sqrt(1.0 + eps)
    shift = beta
    return scale, shift


def _fold(w, b, scale, shift):
    return w * scale[None, :], b * scale[None, :] + shift[None, :]


def init_params(key, input_dim=10, mlp1=(10, 32, 64), mlp2_out=128, extra_size=4,
                nker=(32, 32, 128), mlp3=(128, 128), seq_len=8,
                mlp4=(128, 64, 32), num_classes=20):
    assert mlp1[0] == input_dim
    keys = iter(jax.random.split(key, 64))
    p = {}
    # mlp1 (two linlayers, BN folded)
    w, b = _lin(next(keys), mlp1[0], mlp1[1]); s, t = _bn(next(keys), mlp1[1])
    p["w1a"], p["b1a"] = _fold(w, b, s, t)
    w, b = _lin(next(keys), mlp1[1], mlp1[2]); s, t = _bn(next(keys), mlp1[2])
    p["w1b"], p["b1b"] = _fold(w, b, s, t)
    # mlp2: (mean||std||extra) -> 128 ; split into mean/std part + extra part
    d_in = 2 * mlp1[2] + extra_size
    w, b = _lin(next(keys), d_in, mlp2_out); s, t = _bn(next(keys), mlp2_out)
    w, b = _fold(w, b, s, t)
    p["w2ms"], p["w2e"], p["b2"] = w[:2 * mlp1[2]], w[2 * mlp1[2]:], b
    # temporal convs (Conv1d k=3 p=1); weights stored as (3, Cin, Cout) taps
    cin = mlp2_out
    for li, cout in enumerate(nker, start=1):
        kw, kb = jax.random.split(next(keys))
        w = jax.random.normal(kw, (3, cin, cout), jnp.float32) / jnp.sqrt(3.0 * cin)
        b = 0.01 * jax.random.normal(kb, (1, cout), jnp.float32)
        s, t = _bn(next(keys), cout)
        p[f"cw{li}"] = w * s[None, None, :]
        p[f"cb{li}"] = b * s[None, :] + t[None, :]
        cin = cout
    # FC head: Linear(nker[-1]*T, mlp3[0]) (+BN+ReLU), Linear(mlp3[0], mlp3[1]) (+BN+ReLU)
    w, b = _lin(next(keys), nker[-1] * seq_len, mlp3[0]); s, t = _bn(next(keys), mlp3[0])
    w, b = _fold(w, b, s, t)
    # torch flattens (B, C, T) channel-major (row = c*T + t); rearrange rows to
    # time-major (row = t*C + c) so kernel/reference use h3.reshape(B, T*C).
    p["fw1"] = jnp.transpose(
        w.reshape(nker[-1], seq_len, mlp3[0]), (1, 0, 2)
    ).reshape(nker[-1] * seq_len, mlp3[0])
    p["fb1"] = b
    w, b = _lin(next(keys), mlp3[0], mlp3[1]); s, t = _bn(next(keys), mlp3[1])
    p["fw2"], p["fb2"] = _fold(w, b, s, t)
    # decoder
    w, b = _lin(next(keys), mlp4[0], mlp4[1]); s, t = _bn(next(keys), mlp4[1])
    p["dw1"], p["db1"] = _fold(w, b, s, t)
    w, b = _lin(next(keys), mlp4[1], mlp4[2]); s, t = _bn(next(keys), mlp4[2])
    p["dw2"], p["db2"] = _fold(w, b, s, t)
    p["dw3"], p["db3"] = _lin(next(keys), mlp4[2], num_classes)
    return p


# ======================== Pure-JAX reference (check) ========================

def reference_forward(p, pixels, mask, extra):
    B, T, C, S = pixels.shape
    N = B * T
    x = jnp.transpose(pixels, (0, 1, 3, 2)).reshape(N, S, C)
    m = mask.reshape(N, S, 1).astype(jnp.float32)
    h = jax.nn.relu(x @ p["w1a"] + p["b1a"])
    h = jax.nn.relu(h @ p["w1b"] + p["b1b"])
    msum = m.sum(axis=1)
    mean = (h * m).sum(axis=1) / msum
    diff = (h - mean[:, None, :]) * m
    d = jnp.where(msum == 1.0, 2.0, msum)
    std = jnp.sqrt((diff ** 2).sum(axis=1) / (d - 1.0) + 1e-31)
    e = extra.reshape(N, -1)
    feats = jax.nn.relu(jnp.concatenate([mean, std], axis=-1) @ p["w2ms"]
                        + e @ p["w2e"] + p["b2"])
    feats = feats.reshape(B, T, -1)

    def conv(xp, w, b):
        Tt = xp.shape[1] - 2
        y = (jnp.einsum("btc,cd->btd", xp[:, 0:Tt], w[0])
             + jnp.einsum("btc,cd->btd", xp[:, 1:Tt + 1], w[1])
             + jnp.einsum("btc,cd->btd", xp[:, 2:Tt + 2], w[2]) + b[None])
        return jax.nn.relu(y)

    h1 = conv(jnp.pad(feats, ((0, 0), (1, 1), (0, 0))), p["cw1"], p["cb1"])
    h2 = conv(jnp.pad(h1, ((0, 0), (1, 1), (0, 0))), p["cw2"], p["cb2"])
    h3 = conv(jnp.pad(h2, ((0, 0), (1, 1), (0, 0))), p["cw3"], p["cb3"])
    g = jax.nn.relu(h3.reshape(B, -1) @ p["fw1"] + p["fb1"])
    g = jax.nn.relu(g @ p["fw2"] + p["fb2"])
    g = jax.nn.relu(g @ p["dw1"] + p["db1"])
    g = jax.nn.relu(g @ p["dw2"] + p["db2"])
    return g @ p["dw3"] + p["db3"]


# =================================== Main ===================================

if __name__ == "__main__":
    B, T, C, S, E = 2, 8, 10, 16, 4       # batch, seq_len, channels, pixels, extra
    NUM_CLASSES = 20

    root = jax.random.PRNGKey(0)
    k_pix, k_mask, k_extra, k_par = jax.random.split(root, 4)

    pixels = jax.random.normal(k_pix, (B, T, C, S), jnp.float32)
    mask = (jax.random.uniform(k_mask, (B, T, S)) > 0.3).astype(jnp.float32)
    mask = mask.at[:, :, 0].set(1.0)      # guarantee >= 1 valid pixel per set
    extra = jax.random.normal(k_extra, (B, T, E), jnp.float32)
    positions = jnp.tile(jnp.arange(T, dtype=jnp.int32), (B, 1))

    params = init_params(k_par, input_dim=C, extra_size=E, seq_len=T,
                         num_classes=NUM_CLASSES)

    logits = pse_tempcnn_forward(params, pixels, mask, positions, extra, NUM_CLASSES)
    logits = jax.block_until_ready(logits)

    assert logits.shape == (B, NUM_CLASSES), logits.shape
    ref = jax.block_until_ready(reference_forward(params, pixels, mask, extra))
    assert jnp.allclose(logits, ref, rtol=5e-2, atol=5e-2), (
        "mismatch", float(jnp.max(jnp.abs(logits - ref))))

    print("KERNEL_OK")
</pallas_src>

<mosaic_0001>
module attributes {stable_mosaic.version = 11 : i64} {
  func.func @pse_tempcnn_kernel(%arg0: i32, %arg1: memref<128x10xf32, #tpu.memory_space<vmem>>, %arg2: memref<8x16xf32, #tpu.memory_space<vmem>>, %arg3: memref<8x4xf32, #tpu.memory_space<vmem>>, %arg4: memref<10x32xbf16, #tpu.memory_space<vmem>>, %arg5: memref<1x32xf32, #tpu.memory_space<vmem>>, %arg6: memref<32x64xbf16, #tpu.memory_space<vmem>>, %arg7: memref<1x64xf32, #tpu.memory_space<vmem>>, %arg8: memref<64x128xbf16, #tpu.memory_space<vmem>>, %arg9: memref<64x128xbf16, #tpu.memory_space<vmem>>, %arg10: memref<4x128xbf16, #tpu.memory_space<vmem>>, %arg11: memref<1x128xf32, #tpu.memory_space<vmem>>, %arg12: memref<384x32xbf16, #tpu.memory_space<vmem>>, %arg13: memref<1x32xf32, #tpu.memory_space<vmem>>, %arg14: memref<96x32xbf16, #tpu.memory_space<vmem>>, %arg15: memref<1x32xf32, #tpu.memory_space<vmem>>, %arg16: memref<96x128xbf16, #tpu.memory_space<vmem>>, %arg17: memref<1x128xf32, #tpu.memory_space<vmem>>, %arg18: memref<1024x128xbf16, #tpu.memory_space<vmem>>, %arg19: memref<1x128xf32, #tpu.memory_space<vmem>>, %arg20: memref<128x128xbf16, #tpu.memory_space<vmem>>, %arg21: memref<1x128xf32, #tpu.memory_space<vmem>>, %arg22: memref<128x64xbf16, #tpu.memory_space<vmem>>, %arg23: memref<1x64xf32, #tpu.memory_space<vmem>>, %arg24: memref<64x32xbf16, #tpu.memory_space<vmem>>, %arg25: memref<1x32xf32, #tpu.memory_space<vmem>>, %arg26: memref<32x128xbf16, #tpu.memory_space<vmem>>, %arg27: memref<1x128xf32, #tpu.memory_space<vmem>>, %arg28: memref<1x1x128xf32, #tpu.memory_space<vmem>>) attributes {dimension_semantics = [#tpu.dimension_semantics<parallel>], iteration_bounds = array<i64: 2>, scalar_prefetch = 0 : i64, scratch_operands = 0 : i64, tpu.core_type = #tpu.core_type<tc>, window_params = [{transform_indices = @transform_0, window_bounds = array<i64: 128, 10>}, {transform_indices = @transform_1, window_bounds = array<i64: 8, 16>}, {transform_indices = @transform_2, window_bounds = array<i64: 8, 4>}, {pipeline_mode = #tpu.pipeline_mode<synchronous>, transform_indices = @transform_3, window_bounds = array<i64: 10, 32>}, {pipeline_mode = #tpu.pipeline_mode<synchronous>, transform_indices = @transform_4, window_bounds = array<i64: 1, 32>}, {pipeline_mode = #tpu.pipeline_mode<synchronous>, transform_indices = @transform_5, window_bounds = array<i64: 32, 64>}, {pipeline_mode = #tpu.pipeline_mode<synchronous>, transform_indices = @transform_6, window_bounds = array<i64: 1, 64>}, {pipeline_mode = #tpu.pipeline_mode<synchronous>, transform_indices = @transform_7, window_bounds = array<i64: 64, 128>}, {pipeline_mode = #tpu.pipeline_mode<synchronous>, transform_indices = @transform_8, window_bounds = array<i64: 64, 128>}, {pipeline_mode = #tpu.pipeline_mode<synchronous>, transform_indices = @transform_9, window_bounds = array<i64: 4, 128>}, {pipeline_mode = #tpu.pipeline_mode<synchronous>, transform_indices = @transform_10, window_bounds = array<i64: 1, 128>}, {pipeline_mode = #tpu.pipeline_mode<synchronous>, transform_indices = @transform_11, window_bounds = array<i64: 384, 32>}, {pipeline_mode = #tpu.pipeline_mode<synchronous>, transform_indices = @transform_12, window_bounds = array<i64: 1, 32>}, {pipeline_mode = #tpu.pipeline_mode<synchronous>, transform_indices = @transform_13, window_bounds = array<i64: 96, 32>}, {pipeline_mode = #tpu.pipeline_mode<synchronous>, transform_indices = @transform_14, window_bounds = array<i64: 1, 32>}, {pipeline_mode = #tpu.pipeline_mode<synchronous>, transform_indices = @transform_15, window_bounds = array<i64: 96, 128>}, {pipeline_mode = #tpu.pipeline_mode<synchronous>, transform_indices = @transform_16, window_bounds = array<i64: 1, 128>}, {pipeline_mode = #tpu.pipeline_mode<synchronous>, transform_indices = @transform_17, window_bounds = array<i64: 1024, 128>}, {pipeline_mode = #tpu.pipeline_mode<synchronous>, transform_indices = @transform_18, window_bounds = array<i64: 1, 128>}, {pipeline_mode = #tpu.pipeline_mode<synchronous>, transform_indices = @transform_19, window_bounds = array<i64: 128, 128>}, {pipeline_mode = #tpu.pipeline_mode<synchronous>, transform_indices = @transform_20, window_bounds = array<i64: 1, 128>}, {pipeline_mode = #tpu.pipeline_mode<synchronous>, transform_indices = @transform_21, window_bounds = array<i64: 128, 64>}, {pipeline_mode = #tpu.pipeline_mode<synchronous>, transform_indices = @transform_22, window_bounds = array<i64: 1, 64>}, {pipeline_mode = #tpu.pipeline_mode<synchronous>, transform_indices = @transform_23, window_bounds = array<i64: 64, 32>}, {pipeline_mode = #tpu.pipeline_mode<synchronous>, transform_indices = @transform_24, window_bounds = array<i64: 1, 32>}, {pipeline_mode = #tpu.pipeline_mode<synchronous>, transform_indices = @transform_25, window_bounds = array<i64: 32, 128>}, {pipeline_mode = #tpu.pipeline_mode<synchronous>, transform_indices = @transform_26, window_bounds = array<i64: 1, 128>}, {transform_indices = @transform_27, window_bounds = array<i64: 1, 1, 128>}]} {
    %c0 = arith.constant 0 : index
    %c0_0 = arith.constant 0 : index
    %0 = vector.load %arg1[%c0, %c0_0] : memref<128x10xf32, #tpu.memory_space<vmem>>, vector<128x10xf32>
    %1 = arith.truncf %0 : vector<128x10xf32> to vector<128x10xbf16>
    %c0_1 = arith.constant 0 : index
    %c0_2 = arith.constant 0 : index
    %2 = vector.load %arg4[%c0_1, %c0_2] : memref<10x32xbf16, #tpu.memory_space<vmem>>, vector<10x32xbf16>
    %cst = arith.constant dense<0.000000e+00> : vector<128x32xf32>
    %3 = tpu.matmul %1, %2, %cst {dimension_numbers = #tpu.dot_dimension_numbers<[1], [0], [0], [1], [0, 0, 1, 1], [], []>} : vector<128x10xbf16>, vector<10x32xbf16>, vector<128x32xf32> -> vector<128x32xf32>
    %c0_3 = arith.constant 0 : index
    %c0_4 = arith.constant 0 : index
    %4 = vector.load %arg5[%c0_3, %c0_4] : memref<1x32xf32, #tpu.memory_space<vmem>>, vector<1x32xf32>
    %5 = vector.broadcast %4 : vector<1x32xf32> to vector<128x32xf32>
    %6 = arith.addf %3, %5 : vector<128x32xf32>
    %cst_5 = arith.constant 0.000000e+00 : f32
    %7 = vector.broadcast %cst_5 : f32 to vector<128x32xf32>
    %8 = arith.maximumf %6, %7 : vector<128x32xf32>
    %9 = arith.truncf %8 : vector<128x32xf32> to vector<128x32xbf16>
    %c0_6 = arith.constant 0 : index
    %c0_7 = arith.constant 0 : index
    %10 = vector.load %arg6[%c0_6, %c0_7] : memref<32x64xbf16, #tpu.memory_space<vmem>>, vector<32x64xbf16>
    %cst_8 = arith.constant dense<0.000000e+00> : vector<128x64xf32>
    %11 = tpu.matmul %9, %10, %cst_8 {dimension_numbers = #tpu.dot_dimension_numbers<[1], [0], [0], [1], [0, 0, 1, 1], [], []>} : vector<128x32xbf16>, vector<32x64xbf16>, vector<128x64xf32> -> vector<128x64xf32>
    %c0_9 = arith.constant 0 : index
    %c0_10 = arith.constant 0 : index
    %12 = vector.load %arg7[%c0_9, %c0_10] : memref<1x64xf32, #tpu.memory_space<vmem>>, vector<1x64xf32>
    %13 = vector.broadcast %12 : vector<1x64xf32> to vector<128x64xf32>
    %14 = arith.addf %11, %13 : vector<128x64xf32>
    %cst_11 = arith.constant 0.000000e+00 : f32
    %15 = vector.broadcast %cst_11 : f32 to vector<128x64xf32>
    %16 = arith.maximumf %14, %15 : vector<128x64xf32>
    %17 = vector.shape_cast %16 : vector<128x64xf32> to vector<8x16x64xf32>
    %c0_12 = arith.constant 0 : index
    %c0_13 = arith.constant 0 : index
    %18 = vector.load %arg2[%c0_12, %c0_13] : memref<8x16xf32, #tpu.memory_space<vmem>>, vector<8x16xf32>
    %19 = vector.shape_cast %18 : vector<8x16xf32> to vector<8x16x1xf32>
    %cst_14 = arith.constant dense<0.000000e+00> : vector<8xf32>
    %20 = vector.multi_reduction <add>, %18, %cst_14 [1] : vector<8x16xf32> to vector<8xf32>
    %21 = vector.shape_cast %20 : vector<8xf32> to vector<8x1xf32>
    %22 = vector.broadcast %19 : vector<8x16x1xf32> to vector<8x16x64xf32>
    %23 = arith.mulf %17, %22 : vector<8x16x64xf32>
    %cst_15 = arith.constant dense<0.000000e+00> : vector<8x64xf32>
    %24 = vector.multi_reduction <add>, %23, %cst_15 [1] : vector<8x16x64xf32> to vector<8x64xf32>
    %25 = vector.broadcast %21 : vector<8x1xf32> to vector<8x64xf32>
    %26 = arith.divf %24, %25 : vector<8x64xf32>
    %27 = vector.shape_cast %26 : vector<8x64xf32> to vector<8x1x64xf32>
    %28 = vector.broadcast %27 : vector<8x1x64xf32> to vector<8x16x64xf32>
    %29 = arith.subf %17, %28 : vector<8x16x64xf32>
    %30 = vector.broadcast %19 : vector<8x16x1xf32> to vector<8x16x64xf32>
    %31 = arith.mulf %29, %30 : vector<8x16x64xf32>
    %cst_16 = arith.constant 1.000000e+00 : f32
    %32 = vector.broadcast %cst_16 : f32 to vector<8x1xf32>
    %33 = arith.cmpf oeq, %21, %32 : vector<8x1xf32>
    %cst_17 = arith.constant 2.000000e+00 : f32
    %34 = vector.broadcast %cst_17 : f32 to vector<8x1xf32>
    %35 = arith.select %33, %34, %21 : vector<8x1xi1>, vector<8x1xf32>
    %cst_18 = arith.constant 1.000000e+00 : f32
    %36 = vector.broadcast %cst_18 : f32 to vector<8x1xf32>
    %37 = arith.subf %35, %36 : vector<8x1xf32>
    %38 = arith.mulf %31, %31 : vector<8x16x64xf32>
    %cst_19 = arith.constant dense<0.000000e+00> : vector<8x64xf32>
    %39 = vector.multi_reduction <add>, %38, %cst_19 [1] : vector<8x16x64xf32> to vector<8x64xf32>
    %40 = vector.broadcast %37 : vector<8x1xf32> to vector<8x64xf32>
    %41 = arith.divf %39, %40 : vector<8x64xf32>
    %cst_20 = arith.constant 9.99999979E-32 : f32
    %42 = vector.broadcast %cst_20 : f32 to vector<8x64xf32>
    %43 = arith.addf %41, %42 : vector<8x64xf32>
    %44 = math.sqrt %43 : vector<8x64xf32>
    %45 = arith.truncf %26 : vector<8x64xf32> to vector<8x64xbf16>
    %c0_21 = arith.constant 0 : index
    %c0_22 = arith.constant 0 : index
    %46 = vector.load %arg8[%c0_21, %c0_22] : memref<64x128xbf16, #tpu.memory_space<vmem>>, vector<64x128xbf16>
    %cst_23 = arith.constant dense<0.000000e+00> : vector<8x128xf32>
    %47 = tpu.matmul %45, %46, %cst_23 {dimension_numbers = #tpu.dot_dimension_numbers<[1], [0], [0], [1], [0, 0, 1, 1], [], []>} : vector<8x64xbf16>, vector<64x128xbf16>, vector<8x128xf32> -> vector<8x128xf32>
    %48 = arith.truncf %44 : vector<8x64xf32> to vector<8x64xbf16>
    %c0_24 = arith.constant 0 : index
    %c0_25 = arith.constant 0 : index
    %49 = vector.load %arg9[%c0_24, %c0_25] : memref<64x128xbf16, #tpu.memory_space<vmem>>, vector<64x128xbf16>
    %cst_26 = arith.constant dense<0.000000e+00> : vector<8x128xf32>
    %50 = tpu.matmul %48, %49, %cst_26 {dimension_numbers = #tpu.dot_dimension_numbers<[1], [0], [0], [1], [0, 0, 1, 1], [], []>} : vector<8x64xbf16>, vector<64x128xbf16>, vector<8x128xf32> -> vector<8x128xf32>
    %51 = arith.addf %47, %50 : vector<8x128xf32>
    %c0_27 = arith.constant 0 : index
    %c0_28 = arith.constant 0 : index
    %52 = vector.load %arg3[%c0_27, %c0_28] : memref<8x4xf32, #tpu.memory_space<vmem>>, vector<8x4xf32>
    %53 = arith.truncf %52 : vector<8x4xf32> to vector<8x4xbf16>
    %c0_29 = arith.constant 0 : index
    %c0_30 = arith.constant 0 : index
    %54 = vector.load %arg10[%c0_29, %c0_30] : memref<4x128xbf16, #tpu.memory_space<vmem>>, vector<4x128xbf16>
    %cst_31 = arith.constant dense<0.000000e+00> : vector<8x128xf32>
    %55 = tpu.matmul %53, %54, %cst_31 {dimension_numbers = #tpu.dot_dimension_numbers<[1], [0], [0], [1], [0, 0, 1, 1], [], []>} : vector<8x4xbf16>, vector<4x128xbf16>, vector<8x128xf32> -> vector<8x128xf32>
    %56 = arith.addf %51, %55 : vector<8x128xf32>
    %c0_32 = arith.constant 0 : index
    %c0_33 = arith.constant 0 : index
    %57 = vector.load %arg11[%c0_32, %c0_33] : memref<1x128xf32, #tpu.memory_space<vmem>>, vector<1x128xf32>
    %58 = vector.broadcast %57 : vector<1x128xf32> to vector<8x128xf32>
    %59 = arith.addf %56, %58 : vector<8x128xf32>
    %cst_34 = arith.constant 0.000000e+00 : f32
    %60 = vector.broadcast %cst_34 : f32 to vector<8x128xf32>
    %61 = arith.maximumf %59, %60 : vector<8x128xf32>
    %62 = tpu.iota {dimensions = array<i32: 0>} : vector<8x1xi32>
    %c8_i32 = arith.constant 8 : i32
    %c0_i32 = arith.constant 0 : i32
    %63 = arith.cmpi eq, %c8_i32, %c0_i32 : i32
    %c1_i32 = arith.constant 1 : i32
    %64 = arith.select %63, %c1_i32, %c8_i32 : i32
    %65 = vector.broadcast %64 : i32 to vector<8x1xi32>
    %66 = arith.remsi %62, %65 : vector<8x1xi32>
    %c0_i32_35 = arith.constant 0 : i32
    %67 = vector.broadcast %c0_i32_35 : i32 to vector<8x1xi32>
    %68 = arith.cmpi ne, %66, %67 : vector<8x1xi32>
    %c0_i32_36 = arith.constant 0 : i32
    %69 = vector.broadcast %c0_i32_36 : i32 to vector<8x1xi32>
    %70 = arith.cmpi slt, %66, %69 : vector<8x1xi32>
    %c0_i32_37 = arith.constant 0 : i32
    %71 = arith.cmpi slt, %64, %c0_i32_37 : i32
    %72 = vector.broadcast %71 : i1 to vector<8x1xi1>
    %73 = vector.broadcast %72 : vector<8x1xi1> to vector<8x1xi1>
    %74 = arith.xori %70, %73 : vector<8x1xi1>
    %75 = arith.andi %74, %68 : vector<8x1xi1>
    %76 = vector.broadcast %64 : i32 to vector<8x1xi32>
    %77 = arith.addi %66, %76 : vector<8x1xi32>
    %78 = arith.select %75, %77, %66 : vector<8x1xi1>, vector<8x1xi32>
    %c0_i32_38 = arith.constant 0 : i32
    %79 = vector.broadcast %c0_i32_38 : i32 to vector<8x1xi32>
    %80 = arith.cmpi ne, %78, %79 : vector<8x1xi32>
    %c7_i32 = arith.constant 7 : i32
    %81 = vector.broadcast %c7_i32 : i32 to vector<8x1xi32>
    %82 = arith.cmpi ne, %78, %81 : vector<8x1xi32>
    %83 = vector.extract_strided_slice %61 {offsets = [7, 0], sizes = [1, 128], strides = [1, 1]} : vector<8x128xf32> to vector<1x128xf32>
    %84 = vector.extract_strided_slice %61 {offsets = [0, 0], sizes = [7, 128], strides = [1, 1]} : vector<8x128xf32> to vector<7x128xf32>
    %85 = tpu.concatenate %83, %84 in 0 : vector<1x128xf32>, vector<7x128xf32> -> vector<8x128xf32>
    %cst_39 = arith.constant 0.000000e+00 : f32
    %86 = vector.shape_cast %80 : vector<8x1xi1> to vector<8x1xi1>
    %87 = vector.broadcast %86 : vector<8x1xi1> to vector<8x128xi1>
    %88 = vector.broadcast %cst_39 : f32 to vector<8x128xf32>
    %89 = arith.select %87, %85, %88 : vector<8x128xi1>, vector<8x128xf32>
    %90 = vector.extract_strided_slice %61 {offsets = [1, 0], sizes = [7, 128], strides = [1, 1]} : vector<8x128xf32> to vector<7x128xf32>
    %91 = vector.extract_strided_slice %61 {offsets = [0, 0], sizes = [1, 128], strides = [1, 1]} : vector<8x128xf32> to vector<1x128xf32>
    %92 = tpu.concatenate %90, %91 in 0 : vector<7x128xf32>, vector<1x128xf32> -> vector<8x128xf32>
    %cst_40 = arith.constant 0.000000e+00 : f32
    %93 = vector.shape_cast %82 : vector<8x1xi1> to vector<8x1xi1>
    %94 = vector.broadcast %93 : vector<8x1xi1> to vector<8x128xi1>
    %95 = vector.broadcast %cst_40 : f32 to vector<8x128xf32>
    %96 = arith.select %94, %92, %95 : vector<8x128xi1>, vector<8x128xf32>
    %97 = tpu.concatenate %89, %61, %96 in 1 : vector<8x128xf32>, vector<8x128xf32>, vector<8x128xf32> -> vector<8x384xf32>
    %98 = arith.truncf %97 : vector<8x384xf32> to vector<8x384xbf16>
    %c0_41 = arith.constant 0 : index
    %c0_42 = arith.constant 0 : index
    %99 = vector.load %arg12[%c0_41, %c0_42] : memref<384x32xbf16, #tpu.memory_space<vmem>>, vector<384x32xbf16>
    %cst_43 = arith.constant dense<0.000000e+00> : vector<8x32xf32>
    %100 = tpu.matmul %98, %99, %cst_43 {dimension_numbers = #tpu.dot_dimension_numbers<[1], [0], [0], [1], [0, 0, 1, 1], [], []>} : vector<8x384xbf16>, vector<384x32xbf16>, vector<8x32xf32> -> vector<8x32xf32>
    %c0_44 = arith.constant 0 : index
    %c0_45 = arith.constant 0 : index
    %101 = vector.load %arg13[%c0_44, %c0_45] : memref<1x32xf32, #tpu.memory_space<vmem>>, vector<1x32xf32>
    %102 = vector.broadcast %101 : vector<1x32xf32> to vector<8x32xf32>
    %103 = arith.addf %100, %102 : vector<8x32xf32>
    %cst_46 = arith.constant 0.000000e+00 : f32
    %104 = vector.broadcast %cst_46 : f32 to vector<8x32xf32>
    %105 = arith.maximumf %103, %104 : vector<8x32xf32>
    %106 = vector.extract_strided_slice %105 {offsets = [7, 0], sizes = [1, 32], strides = [1, 1]} : vector<8x32xf32> to vector<1x32xf32>
    %107 = vector.extract_strided_slice %105 {offsets = [0, 0], sizes = [7, 32], strides = [1, 1]} : vector<8x32xf32> to vector<7x32xf32>
    %108 = tpu.concatenate %106, %107 in 0 : vector<1x32xf32>, vector<7x32xf32> -> vector<8x32xf32>
    %cst_47 = arith.constant 0.000000e+00 : f32
    %109 = vector.shape_cast %80 : vector<8x1xi1> to vector<8x1xi1>
    %110 = vector.broadcast %109 : vector<8x1xi1> to vector<8x32xi1>
    %111 = vector.broadcast %cst_47 : f32 to vector<8x32xf32>
    %112 = arith.select %110, %108, %111 : vector<8x32xi1>, vector<8x32xf32>
    %113 = vector.extract_strided_slice %105 {offsets = [1, 0], sizes = [7, 32], strides = [1, 1]} : vector<8x32xf32> to vector<7x32xf32>
    %114 = vector.extract_strided_slice %105 {offsets = [0, 0], sizes = [1, 32], strides = [1, 1]} : vector<8x32xf32> to vector<1x32xf32>
    %115 = tpu.concatenate %113, %114 in 0 : vector<7x32xf32>, vector<1x32xf32> -> vector<8x32xf32>
    %cst_48 = arith.constant 0.000000e+00 : f32
    %116 = vector.shape_cast %82 : vector<8x1xi1> to vector<8x1xi1>
    %117 = vector.broadcast %116 : vector<8x1xi1> to vector<8x32xi1>
    %118 = vector.broadcast %cst_48 : f32 to vector<8x32xf32>
    %119 = arith.select %117, %115, %118 : vector<8x32xi1>, vector<8x32xf32>
    %120 = tpu.concatenate %112, %105, %119 in 1 : vector<8x32xf32>, vector<8x32xf32>, vector<8x32xf32> -> vector<8x96xf32>
    %121 = arith.truncf %120 : vector<8x96xf32> to vector<8x96xbf16>
    %c0_49 = arith.constant 0 : index
    %c0_50 = arith.constant 0 : index
    %122 = vector.load %arg14[%c0_49, %c0_50] : memref<96x32xbf16, #tpu.memory_space<vmem>>, vector<96x32xbf16>
    %cst_51 = arith.constant dense<0.000000e+00> : vector<8x32xf32>
    %123 = tpu.matmul %121, %122, %cst_51 {dimension_numbers = #tpu.dot_dimension_numbers<[1], [0], [0], [1], [0, 0, 1, 1], [], []>} : vector<8x96xbf16>, vector<96x32xbf16>, vector<8x32xf32> -> vector<8x32xf32>
    %c0_52 = arith.constant 0 : index
    %c0_53 = arith.constant 0 : index
    %124 = vector.load %arg15[%c0_52, %c0_53] : memref<1x32xf32, #tpu.memory_space<vmem>>, vector<1x32xf32>
    %125 = vector.broadcast %124 : vector<1x32xf32> to vector<8x32xf32>
    %126 = arith.addf %123, %125 : vector<8x32xf32>
    %cst_54 = arith.constant 0.000000e+00 : f32
    %127 = vector.broadcast %cst_54 : f32 to vector<8x32xf32>
    %128 = arith.maximumf %126, %127 : vector<8x32xf32>
    %129 = vector.extract_strided_slice %128 {offsets = [7, 0], sizes = [1, 32], strides = [1, 1]} : vector<8x32xf32> to vector<1x32xf32>
    %130 = vector.extract_strided_slice %128 {offsets = [0, 0], sizes = [7, 32], strides = [1, 1]} : vector<8x32xf32> to vector<7x32xf32>
    %131 = tpu.concatenate %129, %130 in 0 : vector<1x32xf32>, vector<7x32xf32> -> vector<8x32xf32>
    %cst_55 = arith.constant 0.000000e+00 : f32
    %132 = vector.shape_cast %80 : vector<8x1xi1> to vector<8x1xi1>
    %133 = vector.broadcast %132 : vector<8x1xi1> to vector<8x32xi1>
    %134 = vector.broadcast %cst_55 : f32 to vector<8x32xf32>
    %135 = arith.select %133, %131, %134 : vector<8x32xi1>, vector<8x32xf32>
    %136 = vector.extract_strided_slice %128 {offsets = [1, 0], sizes = [7, 32], strides = [1, 1]} : vector<8x32xf32> to vector<7x32xf32>
    %137 = vector.extract_strided_slice %128 {offsets = [0, 0], sizes = [1, 32], strides = [1, 1]} : vector<8x32xf32> to vector<1x32xf32>
    %138 = tpu.concatenate %136, %137 in 0 : vector<7x32xf32>, vector<1x32xf32> -> vector<8x32xf32>
    %cst_56 = arith.constant 0.000000e+00 : f32
    %139 = vector.shape_cast %82 : vector<8x1xi1> to vector<8x1xi1>
    %140 = vector.broadcast %139 : vector<8x1xi1> to vector<8x32xi1>
    %141 = vector.broadcast %cst_56 : f32 to vector<8x32xf32>
    %142 = arith.select %140, %138, %141 : vector<8x32xi1>, vector<8x32xf32>
    %143 = tpu.concatenate %135, %128, %142 in 1 : vector<8x32xf32>, vector<8x32xf32>, vector<8x32xf32> -> vector<8x96xf32>
    %144 = arith.truncf %143 : vector<8x96xf32> to vector<8x96xbf16>
    %c0_57 = arith.constant 0 : index
    %c0_58 = arith.constant 0 : index
    %145 = vector.load %arg16[%c0_57, %c0_58] : memref<96x128xbf16, #tpu.memory_space<vmem>>, vector<96x128xbf16>
    %cst_59 = arith.constant dense<0.000000e+00> : vector<8x128xf32>
    %146 = tpu.matmul %144, %145, %cst_59 {dimension_numbers = #tpu.dot_dimension_numbers<[1], [0], [0], [1], [0, 0, 1, 1], [], []>} : vector<8x96xbf16>, vector<96x128xbf16>, vector<8x128xf32> -> vector<8x128xf32>
    %c0_60 = arith.constant 0 : index
    %c0_61 = arith.constant 0 : index
    %147 = vector.load %arg17[%c0_60, %c0_61] : memref<1x128xf32, #tpu.memory_space<vmem>>, vector<1x128xf32>
    %148 = vector.broadcast %147 : vector<1x128xf32> to vector<8x128xf32>
    %149 = arith.addf %146, %148 : vector<8x128xf32>
    %cst_62 = arith.constant 0.000000e+00 : f32
    %150 = vector.broadcast %cst_62 : f32 to vector<8x128xf32>
    %151 = arith.maximumf %149, %150 : vector<8x128xf32>
    %152 = vector.shape_cast %151 : vector<8x128xf32> to vector<1x8x128xf32>
    %153 = vector.extract_strided_slice %152 {offsets = [0, 0, 0], sizes = [1, 1, 128], strides = [1, 1, 1]} : vector<1x8x128xf32> to vector<1x1x128xf32>
    %154 = vector.shape_cast %153 : vector<1x1x128xf32> to vector<1x128xf32>
    %155 = vector.extract_strided_slice %152 {offsets = [0, 1, 0], sizes = [1, 1, 128], strides = [1, 1, 1]} : vector<1x8x128xf32> to vector<1x1x128xf32>
    %156 = vector.shape_cast %155 : vector<1x1x128xf32> to vector<1x128xf32>
    %157 = vector.extract_strided_slice %152 {offsets = [0, 2, 0], sizes = [1, 1, 128], strides = [1, 1, 1]} : vector<1x8x128xf32> to vector<1x1x128xf32>
    %158 = vector.shape_cast %157 : vector<1x1x128xf32> to vector<1x128xf32>
    %159 = vector.extract_strided_slice %152 {offsets = [0, 3, 0], sizes = [1, 1, 128], strides = [1, 1, 1]} : vector<1x8x128xf32> to vector<1x1x128xf32>
    %160 = vector.shape_cast %159 : vector<1x1x128xf32> to vector<1x128xf32>
    %161 = vector.extract_strided_slice %152 {offsets = [0, 4, 0], sizes = [1, 1, 128], strides = [1, 1, 1]} : vector<1x8x128xf32> to vector<1x1x128xf32>
    %162 = vector.shape_cast %161 : vector<1x1x128xf32> to vector<1x128xf32>
    %163 = vector.extract_strided_slice %152 {offsets = [0, 5, 0], sizes = [1, 1, 128], strides = [1, 1, 1]} : vector<1x8x128xf32> to vector<1x1x128xf32>
    %164 = vector.shape_cast %163 : vector<1x1x128xf32> to vector<1x128xf32>
    %165 = vector.extract_strided_slice %152 {offsets = [0, 6, 0], sizes = [1, 1, 128], strides = [1, 1, 1]} : vector<1x8x128xf32> to vector<1x1x128xf32>
    %166 = vector.shape_cast %165 : vector<1x1x128xf32> to vector<1x128xf32>
    %167 = vector.extract_strided_slice %152 {offsets = [0, 7, 0], sizes = [1, 1, 128], strides = [1, 1, 1]} : vector<1x8x128xf32> to vector<1x1x128xf32>
    %168 = vector.shape_cast %167 : vector<1x1x128xf32> to vector<1x128xf32>
    %169 = tpu.concatenate %154, %156, %158, %160, %162, %164, %166, %168 in 1 : vector<1x128xf32>, vector<1x128xf32>, vector<1x128xf32>, vector<1x128xf32>, vector<1x128xf32>, vector<1x128xf32>, vector<1x128xf32>, vector<1x128xf32> -> vector<1x1024xf32>
    %170 = arith.truncf %169 : vector<1x1024xf32> to vector<1x1024xbf16>
    %c0_63 = arith.constant 0 : index
    %c0_64 = arith.constant 0 : index
    %171 = vector.load %arg18[%c0_63, %c0_64] : memref<1024x128xbf16, #tpu.memory_space<vmem>>, vector<1024x128xbf16>
    %cst_65 = arith.constant dense<0.000000e+00> : vector<1x128xf32>
    %172 = tpu.matmul %170, %171, %cst_65 {dimension_numbers = #tpu.dot_dimension_numbers<[1], [0], [0], [1], [0, 0, 1, 1], [], []>} : vector<1x1024xbf16>, vector<1024x128xbf16>, vector<1x128xf32> -> vector<1x128xf32>
    %c0_66 = arith.constant 0 : index
    %c0_67 = arith.constant 0 : index
    %173 = vector.load %arg19[%c0_66, %c0_67] : memref<1x128xf32, #tpu.memory_space<vmem>>, vector<1x128xf32>
    %174 = arith.addf %172, %173 : vector<1x128xf32>
    %cst_68 = arith.constant 0.000000e+00 : f32
    %175 = vector.broadcast %cst_68 : f32 to vector<1x128xf32>
    %176 = arith.maximumf %174, %175 : vector<1x128xf32>
    %177 = arith.truncf %176 : vector<1x128xf32> to vector<1x128xbf16>
    %c0_69 = arith.constant 0 : index
    %c0_70 = arith.constant 0 : index
    %178 = vector.load %arg20[%c0_69, %c0_70] : memref<128x128xbf16, #tpu.memory_space<vmem>>, vector<128x128xbf16>
    %cst_71 = arith.constant dense<0.000000e+00> : vector<1x128xf32>
    %179 = tpu.matmul %177, %178, %cst_71 {dimension_numbers = #tpu.dot_dimension_numbers<[1], [0], [0], [1], [0, 0, 1, 1], [], []>} : vector<1x128xbf16>, vector<128x128xbf16>, vector<1x128xf32> -> vector<1x128xf32>
    %c0_72 = arith.constant 0 : index
    %c0_73 = arith.constant 0 : index
    %180 = vector.load %arg21[%c0_72, %c0_73] : memref<1x128xf32, #tpu.memory_space<vmem>>, vector<1x128xf32>
    %181 = arith.addf %179, %180 : vector<1x128xf32>
    %cst_74 = arith.constant 0.000000e+00 : f32
    %182 = vector.broadcast %cst_74 : f32 to vector<1x128xf32>
    %183 = arith.maximumf %181, %182 : vector<1x128xf32>
    %184 = arith.truncf %183 : vector<1x128xf32> to vector<1x128xbf16>
    %c0_75 = arith.constant 0 : index
    %c0_76 = arith.constant 0 : index
    %185 = vector.load %arg22[%c0_75, %c0_76] : memref<128x64xbf16, #tpu.memory_space<vmem>>, vector<128x64xbf16>
    %cst_77 = arith.constant dense<0.000000e+00> : vector<1x64xf32>
    %186 = tpu.matmul %184, %185, %cst_77 {dimension_numbers = #tpu.dot_dimension_numbers<[1], [0], [0], [1], [0, 0, 1, 1], [], []>} : vector<1x128xbf16>, vector<128x64xbf16>, vector<1x64xf32> -> vector<1x64xf32>
    %c0_78 = arith.constant 0 : index
    %c0_79 = arith.constant 0 : index
    %187 = vector.load %arg23[%c0_78, %c0_79] : memref<1x64xf32, #tpu.memory_space<vmem>>, vector<1x64xf32>
    %188 = arith.addf %186, %187 : vector<1x64xf32>
    %cst_80 = arith.constant 0.000000e+00 : f32
    %189 = vector.broadcast %cst_80 : f32 to vector<1x64xf32>
    %190 = arith.maximumf %188, %189 : vector<1x64xf32>
    %191 = arith.truncf %190 : vector<1x64xf32> to vector<1x64xbf16>
    %c0_81 = arith.constant 0 : index
    %c0_82 = arith.constant 0 : index
    %192 = vector.load %arg24[%c0_81, %c0_82] : memref<64x32xbf16, #tpu.memory_space<vmem>>, vector<64x32xbf16>
    %cst_83 = arith.constant dense<0.000000e+00> : vector<1x32xf32>
    %193 = tpu.matmul %191, %192, %cst_83 {dimension_numbers = #tpu.dot_dimension_numbers<[1], [0], [0], [1], [0, 0, 1, 1], [], []>} : vector<1x64xbf16>, vector<64x32xbf16>, vector<1x32xf32> -> vector<1x32xf32>
    %c0_84 = arith.constant 0 : index
    %c0_85 = arith.constant 0 : index
    %194 = vector.load %arg25[%c0_84, %c0_85] : memref<1x32xf32, #tpu.memory_space<vmem>>, vector<1x32xf32>
    %195 = arith.addf %193, %194 : vector<1x32xf32>
    %cst_86 = arith.constant 0.000000e+00 : f32
    %196 = vector.broadcast %cst_86 : f32 to vector<1x32xf32>
    %197 = arith.maximumf %195, %196 : vector<1x32xf32>
    %198 = arith.truncf %197 : vector<1x32xf32> to vector<1x32xbf16>
    %c0_87 = arith.constant 0 : index
    %c0_88 = arith.constant 0 : index
    %199 = vector.load %arg26[%c0_87, %c0_88] : memref<32x128xbf16, #tpu.memory_space<vmem>>, vector<32x128xbf16>
    %cst_89 = arith.constant dense<0.000000e+00> : vector<1x128xf32>
    %200 = tpu.matmul %198, %199, %cst_89 {dimension_numbers = #tpu.dot_dimension_numbers<[1], [0], [0], [1], [0, 0, 1, 1], [], []>} : vector<1x32xbf16>, vector<32x128xbf16>, vector<1x128xf32> -> vector<1x128xf32>
    %c0_90 = arith.constant 0 : index
    %c0_91 = arith.constant 0 : index
    %201 = vector.load %arg27[%c0_90, %c0_91] : memref<1x128xf32, #tpu.memory_space<vmem>>, vector<1x128xf32>
    %202 = arith.addf %200, %201 : vector<1x128xf32>
    %203 = vector.shape_cast %202 : vector<1x128xf32> to vector<1x1x128xf32>
    %c0_92 = arith.constant 0 : index
    %c0_93 = arith.constant 0 : index
    %c0_94 = arith.constant 0 : index
    %204 = vector.load %arg28[%c0_92, %c0_93, %c0_94] : memref<1x1x128xf32, #tpu.memory_space<vmem>>, vector<1x1x128xf32>
    tpu.vector_store %arg28[%c0_92, %c0_93, %c0_94], %203 {strides = array<i32>} : memref<1x1x128xf32, #tpu.memory_space<vmem>>, vector<1x1x128xf32>,
    return
  }
  func.func @transform_0(%arg0: i32) -> (i32, i32) {
    %c0_i32 = arith.constant 0 : i32
    %c0_i32_0 = arith.constant 0 : i32
    return %arg0, %c0_i32 : i32, i32
  }
  func.func @transform_1(%arg0: i32) -> (i32, i32) {
    %c0_i32 = arith.constant 0 : i32
    %c0_i32_0 = arith.constant 0 : i32
    return %arg0, %c0_i32 : i32, i32
  }
  func.func @transform_2(%arg0: i32) -> (i32, i32) {
    %c0_i32 = arith.constant 0 : i32
    %c0_i32_0 = arith.constant 0 : i32
    return %arg0, %c0_i32 : i32, i32
  }
  func.func @transform_3(%arg0: i32) -> (i32, i32) {
    %c0_i32 = arith.constant 0 : i32
    %c0_i32_0 = arith.constant 0 : i32
    %c0_i32_1 = arith.constant 0 : i32
    return %c0_i32, %c0_i32_0 : i32, i32
  }
  func.func @transform_4(%arg0: i32) -> (i32, i32) {
    %c0_i32 = arith.constant 0 : i32
    %c0_i32_0 = arith.constant 0 : i32
    %c0_i32_1 = arith.constant 0 : i32
    return %c0_i32, %c0_i32_0 : i32, i32
  }
  func.func @transform_5(%arg0: i32) -> (i32, i32) {
    %c0_i32 = arith.constant 0 : i32
    %c0_i32_0 = arith.constant 0 : i32
    %c0_i32_1 = arith.constant 0 : i32
    return %c0_i32, %c0_i32_0 : i32, i32
  }
  func.func @transform_6(%arg0: i32) -> (i32, i32) {
    %c0_i32 = arith.constant 0 : i32
    %c0_i32_0 = arith.constant 0 : i32
    %c0_i32_1 = arith.constant 0 : i32
    return %c0_i32, %c0_i32_0 : i32, i32
  }
  func.func @transform_7(%arg0: i32) -> (i32, i32) {
    %c0_i32 = arith.constant 0 : i32
    %c0_i32_0 = arith.constant 0 : i32
    %c0_i32_1 = arith.constant 0 : i32
    return %c0_i32, %c0_i32_0 : i32, i32
  }
  func.func @transform_8(%arg0: i32) -> (i32, i32) {
    %c0_i32 = arith.constant 0 : i32
    %c0_i32_0 = arith.constant 0 : i32
    %c0_i32_1 = arith.constant 0 : i32
    return %c0_i32, %c0_i32_0 : i32, i32
  }
  func.func @transform_9(%arg0: i32) -> (i32, i32) {
    %c0_i32 = arith.constant 0 : i32
    %c0_i32_0 = arith.constant 0 : i32
    %c0_i32_1 = arith.constant 0 : i32
    return %c0_i32, %c0_i32_0 : i32, i32
  }
  func.func @transform_10(%arg0: i32) -> (i32, i32) {
    %c0_i32 = arith.constant 0 : i32
    %c0_i32_0 = arith.constant 0 : i32
    %c0_i32_1 = arith.constant 0 : i32
    return %c0_i32, %c0_i32_0 : i32, i32
  }
  func.func @transform_11(%arg0: i32) -> (i32, i32) {
    %c0_i32 = arith.constant 0 : i32
    %c0_i32_0 = arith.constant 0 : i32
    %c0_i32_1 = arith.constant 0 : i32
    return %c0_i32, %c0_i32_0 : i32, i32
  }
  func.func @transform_12(%arg0: i32) -> (i32, i32) {
    %c0_i32 = arith.constant 0 : i32
    %c0_i32_0 = arith.constant 0 : i32
    %c0_i32_1 = arith.constant 0 : i32
    return %c0_i32, %c0_i32_0 : i32, i32
  }
  func.func @transform_13(%arg0: i32) -> (i32, i32) {
    %c0_i32 = arith.constant 0 : i32
    %c0_i32_0 = arith.constant 0 : i32
    %c0_i32_1 = arith.constant 0 : i32
    return %c0_i32, %c0_i32_0 : i32, i32
  }
  func.func @transform_14(%arg0: i32) -> (i32, i32) {
    %c0_i32 = arith.constant 0 : i32
    %c0_i32_0 = arith.constant 0 : i32
    %c0_i32_1 = arith.constant 0 : i32
    return %c0_i32, %c0_i32_0 : i32, i32
  }
  func.func @transform_15(%arg0: i32) -> (i32, i32) {
    %c0_i32 = arith.constant 0 : i32
    %c0_i32_0 = arith.constant 0 : i32
    %c0_i32_1 = arith.constant 0 : i32
    return %c0_i32, %c0_i32_0 : i32, i32
  }
  func.func @transform_16(%arg0: i32) -> (i32, i32) {
    %c0_i32 = arith.constant 0 : i32
    %c0_i32_0 = arith.constant 0 : i32
    %c0_i32_1 = arith.constant 0 : i32
    return %c0_i32, %c0_i32_0 : i32, i32
  }
  func.func @transform_17(%arg0: i32) -> (i32, i32) {
    %c0_i32 = arith.constant 0 : i32
    %c0_i32_0 = arith.constant 0 : i32
    %c0_i32_1 = arith.constant 0 : i32
    return %c0_i32, %c0_i32_0 : i32, i32
  }
  func.func @transform_18(%arg0: i32) -> (i32, i32) {
    %c0_i32 = arith.constant 0 : i32
    %c0_i32_0 = arith.constant 0 : i32
    %c0_i32_1 = arith.constant 0 : i32
    return %c0_i32, %c0_i32_0 : i32, i32
  }
  func.func @transform_19(%arg0: i32) -> (i32, i32) {
    %c0_i32 = arith.constant 0 : i32
    %c0_i32_0 = arith.constant 0 : i32
    %c0_i32_1 = arith.constant 0 : i32
    return %c0_i32, %c0_i32_0 : i32, i32
  }
  func.func @transform_20(%arg0: i32) -> (i32, i32) {
    %c0_i32 = arith.constant 0 : i32
    %c0_i32_0 = arith.constant 0 : i32
    %c0_i32_1 = arith.constant 0 : i32
    return %c0_i32, %c0_i32_0 : i32, i32
  }
  func.func @transform_21(%arg0: i32) -> (i32, i32) {
    %c0_i32 = arith.constant 0 : i32
    %c0_i32_0 = arith.constant 0 : i32
    %c0_i32_1 = arith.constant 0 : i32
    return %c0_i32, %c0_i32_0 : i32, i32
  }
  func.func @transform_22(%arg0: i32) -> (i32, i32) {
    %c0_i32 = arith.constant 0 : i32
    %c0_i32_0 = arith.constant 0 : i32
    %c0_i32_1 = arith.constant 0 : i32
    return %c0_i32, %c0_i32_0 : i32, i32
  }
  func.func @transform_23(%arg0: i32) -> (i32, i32) {
    %c0_i32 = arith.constant 0 : i32
    %c0_i32_0 = arith.constant 0 : i32
    %c0_i32_1 = arith.constant 0 : i32
    return %c0_i32, %c0_i32_0 : i32, i32
  }
  func.func @transform_24(%arg0: i32) -> (i32, i32) {
    %c0_i32 = arith.constant 0 : i32
    %c0_i32_0 = arith.constant 0 : i32
    %c0_i32_1 = arith.constant 0 : i32
    return %c0_i32, %c0_i32_0 : i32, i32
  }
  func.func @transform_25(%arg0: i32) -> (i32, i32) {
    %c0_i32 = arith.constant 0 : i32
    %c0_i32_0 = arith.constant 0 : i32
    %c0_i32_1 = arith.constant 0 : i32
    return %c0_i32, %c0_i32_0 : i32, i32
  }
  func.func @transform_26(%arg0: i32) -> (i32, i32) {
    %c0_i32 = arith.constant 0 : i32
    %c0_i32_0 = arith.constant 0 : i32
    %c0_i32_1 = arith.constant 0 : i32
    return %c0_i32, %c0_i32_0 : i32, i32
  }
  func.func @transform_27(%arg0: i32) -> (i32, i32, i32) {
    %c0_i32 = arith.constant 0 : i32
    %c0_i32_0 = arith.constant 0 : i32
    %c0_i32_1 = arith.constant 0 : i32
    return %arg0, %c0_i32, %c0_i32_0 : i32, i32, i32
  }
}

</mosaic_0001>

<bundles_post_ra>
// kernel: tpu_custom_call.1
= control target key start
LH: loop header
LB: loop body
LE: loop exit
PB: predicated region body
PF: predicated region fallthrough
CT: control target
= control target key end

     0   :  { %s5724_s0 = inlined_call_operand.vmem [shape: f32[256,10], index: 0, kind: input, shape index: {}]   ;;  %s5725_s1 = inlined_call_operand.vmem [shape: f32[16,16], index: 1, kind: input, shape index: {}]   ;;  %s5726_s2 = inlined_call_operand.vmem [shape: f32[16,4], index: 2, kind: input, shape index: {}]   ;;  %s5727_s3 = inlined_call_operand.vmem [shape: bf16[10,32], index: 3, kind: input, shape index: {}]   ;;  %s5728_s4 = inlined_call_operand.vmem [shape: f32[1,32], index: 4, kind: input, shape index: {}]   ;;  %s5729_s5 = inlined_call_operand.vmem [shape: bf16[32,64], index: 5, kind: input, shape index: {}]   ;;  %s5730_s6 = inlined_call_operand.vmem [shape: f32[1,64], index: 6, kind: input, shape index: {}]   ;;  %s5731_s7 = inlined_call_operand.vmem [shape: bf16[64,128], index: 7, kind: input, shape index: {}]   ;;  %s5732_s8 = inlined_call_operand.vmem [shape: bf16[64,128], index: 8, kind: input, shape index: {}]   ;;  %s5733_s9 = inlined_call_operand.vmem [shape: bf16[4,128], index: 9, kind: input, shape index: {}]   ;;  %s5734_s10 = inlined_call_operand.vmem [shape: f32[1,128], index: 10, kind: input, shape index: {}]   ;;  %s5735_s11 = inlined_call_operand.vmem [shape: bf16[384,32], index: 11, kind: input, shape index: {}]   ;;  %s5736_s12 = inlined_call_operand.vmem [shape: f32[1,32], index: 12, kind: input, shape index: {}]   ;;  %s5737_s13 = inlined_call_operand.vmem [shape: bf16[96,32], index: 13, kind: input, shape index: {}]   ;;  %s5738_s14 = inlined_call_operand.vmem [shape: f32[1,32], index: 14, kind: input, shape index: {}]   ;;  %s5739_s15 = inlined_call_operand.vmem [shape: bf16[96,128], index: 15, kind: input, shape index: {}]   ;;  %s5740_s16 = inlined_call_operand.vmem [shape: f32[1,128], index: 16, kind: input, shape index: {}]   ;;  %s5741_s17 = inlined_call_operand.vmem [shape: bf16[1024,128], index: 17, kind: input, shape index: {}]   ;;  %s5742_s18 = inlined_call_operand.vmem [shape: f32[1,128], index: 18, kind: input, shape index: {}]   ;;  %s5743_s19 = inlined_call_operand.vmem [shape: bf16[128,128], index: 19, kind: input, shape index: {}]   ;;  %s5744_s20 = inlined_call_operand.vmem [shape: f32[1,128], index: 20, kind: input, shape index: {}]   ;;  %s5745_s21 = inlined_call_operand.vmem [shape: bf16[128,64], index: 21, kind: input, shape index: {}]   ;;  %s5746_s22 = inlined_call_operand.vmem [shape: f32[1,64], index: 22, kind: input, shape index: {}]   ;;  %s5747_s23 = inlined_call_operand.vmem [shape: bf16[64,32], index: 23, kind: input, shape index: {}]   ;;  %s5748_s24 = inlined_call_operand.vmem [shape: f32[1,32], index: 24, kind: input, shape index: {}]   ;;  %s5749_s25 = inlined_call_operand.vmem [shape: bf16[32,128], index: 25, kind: input, shape index: {}]   ;;  %s5750_s26 = inlined_call_operand.vmem [shape: f32[1,128], index: 26, kind: input, shape index: {}]   ;;  %s5751_s27 = inlined_call_operand.hbm [shape: f32[2,1,128], index: 27, kind: output, shape index: {}]  }
   0x1   :  { %5781 = sst [smem:[#allocation13_spill]] %s5724_s0 }
   0x2   :  { %5782 = sst [smem:[#allocation14_spill]] %s5725_s1 }
   0x3   :  { %5783 = sst [smem:[#allocation15_spill]] %s5726_s2 }
   0x4   :  { %5784 = sst [smem:[#allocation16_spill]] %s5727_s3 }
   0x5   :  { %5785 = sst [smem:[#allocation17_spill]] %s5728_s4 }
   0x6   :  { %5786 = sst [smem:[#allocation18_spill]] %s5729_s5 }
   0x7   :  { %5787 = sst [smem:[#allocation19_spill]] %s5730_s6 }
   0x8   :  { %5788 = sst [smem:[#allocation20_spill]] %s5731_s7 }
   0x9   :  { %5789 = sst [smem:[#allocation21_spill]] %s5732_s8 }
   0xa   :  { %5790 = sst [smem:[#allocation22_spill]] %s5733_s9 }
   0xb   :  { %5791 = sst [smem:[#allocation23_spill]] %s5734_s10 }
   0xc   :  { %5792 = sst [smem:[#allocation24_spill]] %s5735_s11 }
   0xd   :  { %32 = vsyncpa [#allocation3], 0 }
   0xe   :  { %34 = vsyncpa [#allocation3 + $0x1], 0  ;;  %s4641_s7 = smov 0   ;;  %s4643_s4 = smov 0  }
   0xf   :  { %s4645_s8 = smov 0   ;;  %s4647_s30 = smov 0  }
  0x10 LB: > { %5793 = sst [smem:[#allocation5_spill]] %s4482_s7  ;;  %s4662_s9 = sadd.s32 4294967295, %s4494_s30   ;;  %s4494_s30 = sphi %s4647_s30, %s5839_s30   ;;  %s4490_s8 = sphi %s4645_s8, %s5841_s8   ;;  %s4486_s4 = sphi %s4643_s4, %s5843_s4   ;;  %s4482_s7 = sphi %s4641_s7, %s5842_s7  }
  0x11   : > { %5794 = sst [smem:[#allocation6_spill]] %s4490_s8  ;;  %s3657_s5 = sadd.s32 4294967294, %s4494_s30  }
  0x12   : > { %s4666_s28 = sadd.s32 1, %s4494_s30   ;;  %s629_s0 = sadd.s32 1, %s4490_s8 }
  0x13   : > { %5795 = sst [smem:[#allocation7_spill]] %s4666_s28  ;;  %s626_s10 = ssub.s32 %s4494_s30, %s4666_s28 }
  0x14   : > { %p639_p0 = scmp.ne.s32.totalorder %s4490_s8, %s4486_s4  ;;  %p627_p1 = scmp.eq.s32.totalorder %s626_s10, 0 }
  0x15   : > { %p640_p2 = scmp.eq.s32.totalorder %s4662_s9, 1  ;;  %p645_p3 = scmp.ne.s32.totalorder %s4486_s4, %s4482_s7 }
  0x16   : > { %p646_p4 = scmp.eq.s32.totalorder %s3657_s5, 1  ;;  %p3660_p7 = scmp.ge.s32.totalorder %s4494_s30, 1 }
  0x17   : > { %s4677_s29 = scalar_select %p627_p1, %s4490_s8, %s629_s0  }
  0x18   : > { %p4679_p5 = por %p640_p2, %p639_p0  ;;  %p4683_p6 = por %p646_p4, %p645_p3 }
  0x19   : > { %5796 = sst [smem:[#allocation8_spill]] %s4677_s29  ;;  %p759_p8 = scmp.lt.s32.totalorder %s4494_s30, 3 }
  0x1a   : > { %s5798_s6 = scalar_select %p4683_p6, 1, 0 }
  0x1b   : > { %p760_p9 = pnand %p3660_p7, %p759_p8 }
  0x1c   : > { %5799 = sst [smem:[#allocation9_spill]] %s5798_s6 }
  0x1d   : > { %763 = sbr.rel (%p760_p9) target bundleno = 2890 (0xb4a), region = 128 }
  0x24   : > { %s5800_s3 = sld [smem:[#allocation16_spill]]  ;;  %vm916_vm0 = vcmask 1044480   ;;  %s4693_s5 = sshll.u32 %s4662_s9, 4  ;;  %vm891_vm1 = vcmask 80896   ;;  %v1203_v28 = vlaneseq  ;;  %vm1291_vm2 = vcmask 130048  }
  0x25   : > { %p839_p10 = scmp.lt.s32.totalorder %s4693_s5, 31  ;;  %s5801_s28 = sld [smem:[#allocation13_spill]]  ;;  %vm1064_vm3 = vcmask 261120   ;;  %vm4497_vm4 = vmmov 0   ;;  %vm1311_vm6 = vcmask 523264   ;;  %vm1716_vm7 = vcmask 1041409  }
  0x26   : > { %s5802_s29 = sld [smem:[#allocation18_spill]]  ;;  %p844_p11 = scmp.lt.s32.totalorder %s4662_s9, 1  ;;  %v4718_v29 = vshrl.u32 %v1203_v28, 7  ;;  %vm1719_vm8 = vcmask 1042434   ;;  %vm1722_vm9 = vcmask 1043459   ;;  %vm1725_vm10 = vcmask 1044484  }
  0x27   : > { %s840_s0 = scalar_select %p839_p10, %s4693_s5, 31  ;;  %vm1728_vm13 = vcmask 1045509  }
  0x28   : > { %s5845_s9 = smov (!%p844_p11, %s4662_s9), 1  ;;  %5803 = vst [vmem:[#allocation10_spill] sm:$0xff] %v4718_v29  ;;  %v1216_v30 = vsub.s32 1, %v4718_v29  ;;  %v1227_v31 = vsub.s32 2, %v4718_v29  ;;  %v4729_v36 = vsub.s32 0, %v4718_v29  ;;  %v1238_v38 = vsub.s32 3, %v4718_v29 }
  0x29   : > { %s3662_s10 = sshll.u32 %s840_s0, 3  ;;  %v1249_v40 = vsub.s32 4, %v4718_v29  ;;  %v1260_v42 = vsub.s32 5, %v4718_v29  ;;  %v1271_v44 = vsub.s32 6, %v4718_v29  ;;  %v1282_v46 = vsub.s32 7, %v4718_v29  ;;  %s5805_s2 = sld [smem:[#allocation17_spill]] }
  0x2a   : > { %v4251_v0 = vld [vmem:[%s5800_s3] sm:$0x1f]   ;;  %s5807_s11 = sld [smem:[#allocation21_spill]]  ;;  %s5808_s0 = sld [smem:[#allocation19_spill]] }
  0x2b   : > { %4207 = vmatprep.subr.msk.bf16.mxu0 %vm916_vm0, %v4251_v0  ;;  %v918_v1 = vsel %vm916_vm0, %v4251_v0, 0  ;;  %s842_s6 = scalar_lea.vmem %s5801_s28, %s3662_s10  ;;  %s5804_s10 = sld [smem:[#allocation14_spill]] }
  0x2c   : > { %4028 = vmatpush3.bf16.msra.mxu0 %v918_v1  ;;  %v853_v2 = vld [vmem:[%s842_s6] sm:$0xff]  ;;  %v854_v3 = vld [vmem:[%s842_s6 + $0x8] sm:$0xff]  ;;  %v855_v4 = vld [vmem:[%s842_s6 + $0x10] sm:$0xff]  ;;  %s5825_s3 = sld [smem:[#allocation22_spill]]  ;;  %s5778_s7 = smov 64  }
  0x2d   : > { %v869_v5 = vpack.c.bf16 %v854_v3, %v853_v2  ;;  %v856_v6 = vld [vmem:[%s842_s6 + $0x18] sm:$0xff]  ;;  %v857_v7 = vld [vmem:[%s842_s6 + $0x20] sm:$0xff]  ;;  %v858_v8 = vld [vmem:[%s842_s6 + $0x28] sm:$0xff] }
  0x2e   : > { %v870_v9 = vpack.c.bf16 %v856_v6, %v855_v4  ;;  %v871_v10 = vpack.c.bf16 %v858_v8, %v857_v7  ;;  %v859_v11 = vld [vmem:[%s842_s6 + $0x30] sm:$0xff]  ;;  %v860_v12 = vld [vmem:[%s842_s6 + $0x38] sm:$0xff]  ;;  %v861_v13 = vld [vmem:[%s842_s6 + $0x40] sm:$0xff] }
  0x2f   : > { %4029 = vmatprep.mubr.msk.bf16.mxu0 %vm891_vm1, %v869_v5  ;;  %v862_v14 = vld [vmem:[%s842_s6 + $0x48] sm:$0xff]  ;;  %v872_v15 = vpack.c.bf16 %v860_v12, %v859_v11  ;;  %v863_v17 = vld [vmem:[%s842_s6 + $0x50] sm:$0xff]  ;;  %v864_v18 = vld [vmem:[%s842_s6 + $0x58] sm:$0xff] }
  0x30   : > { %4030 = vmatmul.mubr.msk.bf16.vlgmr.msra.gmra.mrb[0].mxu0 %vm891_vm1, %v870_v9  ;;  %v873_v16 = vpack.c.bf16 %v862_v14, %v861_v13  ;;  %v865_v19 = vld [vmem:[%s842_s6 + $0x60] sm:$0xff]  ;;  %v866_v20 = vld [vmem:[%s842_s6 + $0x68] sm:$0xff]  ;;  %v874_v21 = vpack.c.bf16 %v864_v18, %v863_v17  ;;  %v867_v23 = vld [vmem:[%s842_s6 + $0x70] sm:$0xff] }
  0x31   : > { %4033 = vmatprep.mubr.msk.bf16.mxu0 %vm891_vm1, %v871_v10  ;;  %v875_v22 = vpack.c.bf16 %v866_v20, %v865_v19  ;;  %v868_v24 = vld [vmem:[%s842_s6 + $0x78] sm:$0xff]  ;;  %v4252_v26 = vld [vmem:[%s5802_s29] sm:$0xff]   ;;  %v4253_v27 = vld [vmem:[%s5802_s29 + $0x8] sm:$0xff]   ;;  %s3663_s6 = sshll.u32 %s5845_s9, 3  ;;  %s5829_s9 = sld [smem:[#allocation23_spill]] }
  0x32   : > { %v876_v25 = vpack.c.bf16 %v868_v24, %v867_v23  ;;  %4045 = vmatprep.subr.bf16.mxu1 %v4252_v26  ;;  %s847_s8 = scalar_lea.vmem %s5804_s10, %s3663_s6  ;;  %v3665_v48 = vld [vmem:[%s5805_s2] ss:$0 sm:$0xff]  ;;  %s5806_s10 = sld [smem:[#allocation20_spill]] }
  0x33   : > { %4046 = vmatpush3.bf16.msra.mxu1 %v4252_v26  ;;  %v1202_v32 = vld [vmem:[%s847_s8] sm:$0xff]  ;;  %s5828_s2 = sld [smem:[#allocation24_spill]]  ;;  %s4500_s8 = smov [#allocation2]  }
  0x34   : > { %4047 = vmatprep.subr.bf16.mxu1 %v4253_v27  ;;  %v1292_v33 = vsel %vm1291_vm2, %v1202_v32, 0.0  ;;  %v1217_v34 = vrot.slane %v1202_v32, %v1216_v30  ;;  %v1228_v35 = vrot.slane %v1202_v32, %v1227_v31  ;;  %v1206_v37 = vrot.slane %v1202_v32, %v4729_v36  ;;  %s4436_s28 = sshll.u32 %s4500_s8, 4  ;;  %s4437_s28 = int_to_ptr.vmem [resolvable:$false] %s4436_s28 }
  0x35   : > { %1293 = vadd.xlane.f32.xlu0 %v1292_v33  ;;  %v1239_v39 = vrot.slane %v1202_v32, %v1238_v38  ;;  %v1250_v41 = vrot.slane %v1202_v32, %v1249_v40  ;;  %v1261_v43 = vrot.slane %v1202_v32, %v1260_v42  ;;  %v1272_v45 = vrot.slane %v1202_v32, %v1271_v44 }
  0x36   : > { %1223 = vbcast.lane.b32.xlu1 %v1217_v34, 264  ;;  %v1283_v47 = vrot.slane %v1202_v32, %v1282_v46  ;;  %v5760_v44 = vmov 0.0  }
  0x37   : > { %4048 = vmatpush3.bf16.msra.mxu1 %v4253_v27  ;;  %4065 = vmatprep.subr.bf16.mxu0 %v5760_v44 }
  0x38   : > { %4034 = vmatmul.mubr.msk.bf16.gmra.mrb[4].mxu0 %vm891_vm1, %v872_v15  ;;  %4077 = vmatprep.subr.bf16.mxu1 %v5760_v44  ;;  %v4256_v46 = vld [vmem:[%s5806_s10 + $0x10] sm:$0xff]  }
  0x39   : > { %4037 = vmatprep.mubr.msk.bf16.mxu0 %vm891_vm1, %v873_v16 }
  0x3a   : > { %1230 = vbcast.lane.b32.xlu1 %v1228_v35, 256 }
  0x3e   : > { %1234 = vbcast.lane.b32.xlu1 %v1228_v35, 264 }
  0x40   : > { %4038 = vmatmul.mubr.msk.bf16.gmra.mrb[8].mxu0 %vm891_vm1, %v874_v21 }
  0x41   : > { %4041 = vmatprep.mubr.msk.bf16.mxu0 %vm891_vm1, %v875_v22 }
  0x42   : > { %1208 = vbcast.lane.b32.xlu1 %v1206_v37, 256 }
  0x46   : > { %1212 = vbcast.lane.b32.xlu1 %v1206_v37, 264 }
  0x48   : > { %4042 = vmatmul.mubr.msk.bf16.gmra.mrb[12].mxu0 %vm891_vm1, %v876_v25 }
  0x49   : > { %4073 = vmatprep.mubr.msk.bf16.mxu0 %vm4497_vm4, %v5760_v44 }
  0x4a   : > { %1241 = vbcast.lane.b32.xlu1 %v1239_v39, 256 }
  0x4b   : > { %1219 = vbcast.lane.b32.xlu0 %v1217_v34, 256 }
  0x4e   : > { %1245 = vbcast.lane.b32.xlu1 %v1239_v39, 264 }
  0x4f   : > { %1252 = vbcast.lane.b32.xlu0 %v1250_v41, 256 }
  0x52   : > { %1256 = vbcast.lane.b32.xlu1 %v1250_v41, 264 }
  0x53   : > { %1263 = vbcast.lane.b32.xlu0 %v1261_v43, 256 }
  0x56   : > { %1267 = vbcast.lane.b32.xlu1 %v1261_v43, 264  ;;  %v4254_v43 = vld [vmem:[%s5806_s10] sm:$0xff]  }
  0x57   : > { %1274 = vbcast.lane.b32.xlu0 %v1272_v45, 256 }
  0x5a   : > { %1278 = vbcast.lane.b32.xlu1 %v1272_v45, 264  ;;  %v4255_v45 = vld [vmem:[%s5806_s10 + $0x8] sm:$0xff]  }
  0x5b   : > { %1285 = vbcast.lane.b32.xlu0 %v1283_v47, 256 }
  0x5e   : > { %1289 = vbcast.lane.b32.xlu1 %v1283_v47, 264  ;;  %v4257_v47 = vld [vmem:[%s5806_s10 + $0x18] sm:$0xff]   ;;  %s5826_s10 = sld [smem:[#allocation15_spill]] }
 0x103   : > { %v4031_v49 = vpop.f32.mrb[0].mxu0 }
 0x104   : > { %v963_v50 = vadd.f32 %v4031_v49, %v3665_v48  ;;  %v954_v51 = vpop.f32.mrb[1].mxu0 }
 0x105   : > { %v955_v52 = vadd.f32 %v3665_v48, %v954_v51  ;;  %v4032_v53 = vpop.f32.mrb[2].mxu0  ;;  %v4775_v51 = vpop.xlane.xlu0 %1293 }
 0x106   : > { %v966_v54 = vadd.f32 %v4032_v53, %v3665_v48  ;;  %v957_v55 = vpop.f32.mrb[3].mxu0  ;;  %v1019_v57 = vmax.f32 %v963_v50, 0.0  ;;  %vm1480_vm5 = vcmp.eq.f32.partialorder %v4775_v51, 1.0 }
 0x107   : > { %v958_v56 = vadd.f32 %v3665_v48, %v957_v55  ;;  %v1017_v59 = vmax.f32 %v955_v52, 0.0  ;;  %v1481_v53 = vsel %vm1480_vm5, 2.0, %v4775_v51 }
 0x108   : > { %v1020_v58 = vmax.f32 %v966_v54, 0.0  ;;  %v4781_v54 = vadd.f32 -1.0, %v1481_v53 }
 0x109   : > { %v1018_v60 = vmax.f32 %v958_v56, 0.0  ;;  %v4258_v56 = vld [vmem:[%s5807_s11] sm:$0xff]  }
 0x10a   : > { %v1034_v61 = vpack.c.bf16 %v1020_v58, %v1019_v57  ;;  %v4791_v57 = vld [vmem:[%s5808_s0] ss:$0 sm:$0xff]  ;;  %v1385_v58 = vrot.slane %v4775_v51, 1  ;;  %4066 = vmatpush3.bf16.msra.mxu0 %v4258_v56  ;;  %s5779_s0 = smov 32  }
 0x10b   : > { %v4035_v62 = vpop.f32.mrb[4].mxu0  ;;  %v1033_v63 = vpack.c.bf16 %v1018_v60, %v1017_v59  ;;  %v1572_v59 = vrot.slane %v4781_v54, 1  ;;  %4067 = vmatprep.subr.bf16.mxu0 %v5760_v44 }
 0x10c   : > { %v979_v0 = vadd.f32 %v4035_v62, %v3665_v48  ;;  %v970_v1 = vpop.f32.mrb[5].mxu0  ;;  %4384 = vrcp.f32 %v1385_v58 }
 0x10d   : > { %v971_v2 = vadd.f32 %v3665_v48, %v970_v1  ;;  %v4036_v3 = vpop.f32.mrb[6].mxu0  ;;  %4049 = vmatprep.mubr.msk.bf16.mxu1 %vm1064_vm3, %v1033_v63  ;;  %v4799_v63 = vpop.permute.xlu0 %1219  ;;  %v4259_v1 = vld [vmem:[%s5807_s11 + $0x8] sm:$0xff]   ;;  %4386 = vrcp.f32 %v1572_v59 }
 0x10e   : > { %v982_v4 = vadd.f32 %v4036_v3, %v3665_v48  ;;  %v973_v5 = vpop.f32.mrb[7].mxu0  ;;  %4050 = vmatmul.mubr.msk.bf16.vlgmr.msra.gmra.mrb[0].mxu1 %vm1064_vm3, %v1034_v61  ;;  %v1023_v7 = vmax.f32 %v979_v0, 0.0  ;;  %v1386_v0 = vrot.slane %v4775_v51, 2  ;;  %4068 = vmatpush3.bf16.msra.mxu0 %v4259_v1  ;;  %4388 = vrcp.f32 %v4775_v51 }
 0x10f   : > { %v974_v6 = vadd.f32 %v3665_v48, %v973_v5  ;;  %v1021_v9 = vmax.f32 %v971_v2, 0.0  ;;  %4078 = vmatpush3.bf16.msra.mxu1 %v4254_v43  ;;  %4069 = vmatprep.subr.bf16.mxu0 %v5760_v44 }
 0x110   : > { %v1024_v8 = vmax.f32 %v982_v4, 0.0  ;;  %4079 = vmatprep.subr.bf16.mxu1 %v5760_v44  ;;  %4390 = vrcp.f32 %v1386_v0 }
 0x111   : > { %v1022_v10 = vmax.f32 %v974_v6, 0.0  ;;  %4392 = vrcp.f32 %v4781_v54 }
 0x112   : > { %v1036_v11 = vpack.c.bf16 %v1024_v8, %v1023_v7  ;;  %v1387_v8 = vrot.slane %v4775_v51, 3 }
 0x113   : > { %v1035_v12 = vpack.c.bf16 %v1022_v10, %v1021_v9  ;;  %v4039_v13 = vpop.f32.mrb[8].mxu0  ;;  %4080 = vmatpush3.bf16.msra.mxu1 %v4255_v45  ;;  %v4260_v9 = vld [vmem:[%s5807_s11 + $0x10] sm:$0xff]  }
 0x114   : > { %v995_v14 = vadd.f32 %v4039_v13, %v3665_v48  ;;  %v986_v15 = vpop.f32.mrb[9].mxu0  ;;  %4081 = vmatprep.subr.bf16.mxu1 %v5760_v44  ;;  %4394 = vrcp.f32 %v1387_v8  ;;  %4070 = vmatpush3.bf16.msra.mxu0 %v4260_v9 }
 0x115   : > { %v987_v16 = vadd.f32 %v3665_v48, %v986_v15  ;;  %v4040_v17 = vpop.f32.mrb[10].mxu0  ;;  %4053 = vmatprep.mubr.msk.bf16.mxu1 %vm1064_vm3, %v1035_v12  ;;  %v1573_v12 = vrot.slane %v4781_v54, 2  ;;  %4071 = vmatprep.subr.bf16.mxu0 %v5760_v44 }
 0x116   : > { %v998_v18 = vadd.f32 %v4040_v17, %v3665_v48  ;;  %v989_v19 = vpop.f32.mrb[11].mxu0  ;;  %4054 = vmatmul.mubr.msk.bf16.gmra.mrb[4].mxu1 %vm1064_vm3, %v1036_v11  ;;  %v1027_v21 = vmax.f32 %v995_v14, 0.0 }
 0x117   : > { %v990_v20 = vadd.f32 %v3665_v48, %v989_v19  ;;  %v1025_v23 = vmax.f32 %v987_v16, 0.0  ;;  %4082 = vmatpush3.bf16.msra.mxu1 %v4256_v46  ;;  %4396 = vrcp.f32 %v1573_v12  ;;  %v4870_v46 = vpop.permute.xlu0 %1252 }
 0x118   : > { %v1028_v22 = vmax.f32 %v998_v18, 0.0  ;;  %4083 = vmatprep.subr.bf16.mxu1 %v5760_v44  ;;  %v4261_v18 = vld [vmem:[%s5807_s11 + $0x18] sm:$0xff]   ;;  %s851_s11 = scalar_lea.vmem %s5826_s10, %s3663_s6 }
 0x119   : > { %v1026_v24 = vmax.f32 %v990_v20, 0.0  ;;  %4072 = vmatpush3.bf16.msra.mxu0 %v4261_v18 }
 0x11a   : > { %v1038_v25 = vpack.c.bf16 %v1028_v22, %v1027_v21  ;;  %v1574_v21 = vrot.slane %v4781_v54, 3  ;;  %4089 = vmatprep.subr.bf16.mxu0 %v5760_v44 }
 0x11b   : > { %v1037_v26 = vpack.c.bf16 %v1026_v24, %v1025_v23  ;;  %v4043_v27 = vpop.f32.mrb[12].mxu0  ;;  %4084 = vmatpush3.bf16.msra.mxu1 %v4257_v47  ;;  %v1388_v23 = vrot.slane %v4775_v51, 4 }
 0x11c   : > { %v1011_v28 = vadd.f32 %v4043_v27, %v3665_v48  ;;  %v1002_v30 = vpop.f32.mrb[13].mxu0  ;;  %4398 = vrcp.f32 %v1574_v21 }
 0x11d   : > { %v1003_v31 = vadd.f32 %v3665_v48, %v1002_v30  ;;  %v4044_v32 = vpop.f32.mrb[14].mxu0  ;;  %4057 = vmatprep.mubr.msk.bf16.mxu1 %vm1064_vm3, %v1037_v26  ;;  %4400 = vrcp.f32 %v1388_v23 }
 0x11e   : > { %v1014_v33 = vadd.f32 %v4044_v32, %v3665_v48  ;;  %v1005_v34 = vpop.f32.mrb[15].mxu0  ;;  %4058 = vmatmul.mubr.msk.bf16.gmra.mrb[8].mxu1 %vm1064_vm3, %v1038_v25  ;;  %v1031_v37 = vmax.f32 %v1011_v28, 0.0  ;;  %v1389_v28 = vrot.slane %v4775_v51, 5 }
 0x11f   : > { %v1006_v35 = vadd.f32 %v3665_v48, %v1005_v34  ;;  %v1029_v39 = vmax.f32 %v1003_v31, 0.0  ;;  %v4769_v48 = vpop.permute.xlu1 %1223 }
 0x120   : > { %v1032_v38 = vmax.f32 %v1014_v33, 0.0  ;;  %4402 = vrcp.f32 %v1389_v28 }
 0x121   : > { %v1030_v40 = vmax.f32 %v1006_v35, 0.0 }
 0x122   : > { %v1040_v41 = vpack.c.bf16 %v1032_v38, %v1031_v37 }
 0x123   : > { %v1039_v42 = vpack.c.bf16 %v1030_v40, %v1029_v39  ;;  %v4771_v49 = vpop.permute.xlu1 %1230  ;;  %v1575_v40 = vrot.slane %v4781_v54, 4 }
 0x125   : > { %4061 = vmatprep.mubr.msk.bf16.mxu1 %vm1064_vm3, %v1039_v42  ;;  %4404 = vrcp.f32 %v1575_v40 }
 0x126   : > { %4062 = vmatmul.mubr.msk.bf16.gmra.mrb[12].mxu1 %vm1064_vm3, %v1040_v41  ;;  %v4864_v41 = vpop.eup %4384 }
 0x127   : > { %4085 = vmatprep.mubr.msk.bf16.mxu1 %vm4497_vm4, %v5760_v44  ;;  %v4773_v50 = vpop.permute.xlu1 %1234  ;;  %v4873_v47 = vpop.eup %4386 }
 0x128   : > { %v4389_v59 = vpop.eup %4388 }
 0x12b   : > { %v4778_v52 = vpop.permute.xlu1 %1208 }
 0x12f   : > { %v4783_v55 = vpop.permute.xlu1 %1212 }
 0x133   : > { %v4808_v4 = vpop.permute.xlu1 %1241 }
 0x137   : > { %v4844_v22 = vpop.permute.xlu1 %1245 }
 0x13b   : > { %v4883_v1 = vpop.permute.xlu1 %1256 }
 0x1e1   : > { %v4051_v60 = vpop.f32.mrb[0].mxu1 }
 0x1e2   : > { %v4797_v61 = vadd.f32 %v4051_v60, %v4791_v57  ;;  %v1123_v62 = vpop.f32.mrb[1].mxu1 }
 0x1e3   : > { %v4806_v2 = vadd.f32 %v4791_v57, %v1123_v62  ;;  %v4052_v3 = vpop.f32.mrb[2].mxu1 }
 0x1e4   : > { %v1188_v5 = vmax.f32 %v4797_v61, 0.0  ;;  %v4812_v6 = vadd.f32 %v4052_v3, %v4791_v57  ;;  %v1126_v7 = vpop.f32.mrb[3].mxu1  ;;  %v4885_v3 = vpop.eup %4390 }
 0x1e5   : > { %v5771_v10 = vmax.f32 %v4806_v2, 0.0  ;;  %v4820_v11 = vadd.f32 %v4791_v57, %v1126_v7  ;;  %v4890_v9 = vpop.eup %4392 }
 0x1e6   : > { %v1189_v13 = vmax.f32 %v4812_v6, 0.0  ;;  %v1297_v14 = vmul.f32 %v4799_v63, %v1188_v5 }
 0x1e7   : > { %v1295_v15 = vmul.f32 %v4778_v52, %v5771_v10  ;;  %v5770_v16 = vmax.f32 %v4820_v11, 0.0 }
 0x1e8   : > { %v1298_v17 = vmul.f32 %v4769_v48, %v1189_v13  ;;  %v1321_v25 = vsel %vm1311_vm6, %v1297_v14, 0.0 }
 0x1e9   : > { %v1296_v19 = vmul.f32 %v4783_v55, %v5770_v16  ;;  %v4055_v20 = vpop.f32.mrb[4].mxu1  ;;  %v1312_v30 = vsel %vm1311_vm6, %v1295_v15, 0.0 }
 0x1ea   : > { %v1322_v24 = vsel %vm1311_vm6, %v1298_v17, 0.0  ;;  %v4851_v26 = vadd.f32 %v4055_v20, %v4791_v57  ;;  %v1139_v27 = vpop.f32.mrb[5].mxu1 }
 0x1eb   : > { %v1323_v31 = vadd.f32 %v1322_v24, %v1321_v25  ;;  %v1313_v32 = vsel %vm1311_vm6, %v1296_v19, 0.0  ;;  %v4857_v33 = vadd.f32 %v4791_v57, %v1139_v27  ;;  %v4056_v34 = vpop.f32.mrb[6].mxu1  ;;  %v4897_v19 = vpop.eup %4394 }
 0x1ec   : > { %v1314_v35 = vadd.f32 %v1313_v32, %v1312_v30  ;;  %v5769_v37 = vmax.f32 %v4851_v26, 0.0  ;;  %v4861_v38 = vadd.f32 %v4056_v34, %v4791_v57  ;;  %v1142_v39 = vpop.f32.mrb[7].mxu1  ;;  %v4904_v27 = vpop.eup %4396 }
 0x1ed   : > { %v1324_v42 = vrot.slane %v1323_v31, 4  ;;  %v5764_v43 = vmax.f32 %v4857_v33, 0.0  ;;  %v4868_v45 = vadd.f32 %v4791_v57, %v1142_v39 }
 0x1ee   : > { %v1315_v53 = vrot.slane %v1314_v35, 4  ;;  %v1301_v56 = vmul.f32 %v4808_v4, %v5769_v37  ;;  %v5768_v58 = vmax.f32 %v4861_v38, 0.0 }
 0x1ef   : > { %v1325_v60 = vadd.f32 %v1324_v42, %v1323_v31  ;;  %v1299_v62 = vmul.f32 %v4771_v49, %v5764_v43  ;;  %v5762_v0 = vmax.f32 %v4868_v45, 0.0 }
 0x1f0   : > { %v1316_v7 = vadd.f32 %v1315_v53, %v1314_v35  ;;  %v1302_v8 = vmul.f32 %v4844_v22, %v5768_v58  ;;  %v1339_v14 = vsel %vm1311_vm6, %v1301_v56, 0.0  ;;  %v4910_v35 = vpop.permute.xlu0 %1263 }
 0x1f1   : > { %v1326_v12 = vrot.slane %v1325_v60, 2  ;;  %v1300_v15 = vmul.f32 %v4773_v50, %v5762_v0  ;;  %v4059_v17 = vpop.f32.mrb[8].mxu1  ;;  %v1330_v21 = vsel %vm1311_vm6, %v1299_v62, 0.0 }
 0x1f2   : > { %v1317_v20 = vrot.slane %v1316_v7, 2  ;;  %v1340_v23 = vsel %vm1311_vm6, %v1302_v8, 0.0  ;;  %v4902_v24 = vadd.f32 %v4059_v17, %v4791_v57  ;;  %v1155_v25 = vpop.f32.mrb[9].mxu1 }
 0x1f3   : > { %v1327_v28 = vadd.f32 %v1326_v12, %v1325_v60  ;;  %v1331_v30 = vsel %vm1311_vm6, %v1300_v15, 0.0  ;;  %v1341_v31 = vadd.f32 %v1340_v23, %v1339_v14  ;;  %v4908_v32 = vadd.f32 %v4791_v57, %v1155_v25  ;;  %v4060_v34 = vpop.f32.mrb[10].mxu1  ;;  %v4920_v14 = vpop.permute.xlu1 %1267 }
 0x1f4   : > { %v1318_v39 = vadd.f32 %v1317_v20, %v1316_v7  ;;  %v1332_v40 = vadd.f32 %v1331_v30, %v1330_v21  ;;  %v5763_v42 = vmax.f32 %v4902_v24, 0.0  ;;  %v4914_v53 = vadd.f32 %v4060_v34, %v4791_v57  ;;  %v1158_v56 = vpop.f32.mrb[11].mxu1  ;;  %5809 = vst [vmem:[#allocation11_spill] sm:$0xff] %v4920_v14  ;;  %v4926_v21 = vpop.eup %4398 }
 0x1f5   : > { %v1328_v62 = vrot.slane %v1327_v28, 1  ;;  %v1342_v8 = vrot.slane %v1341_v31, 4  ;;  %v5766_v60 = vmax.f32 %v4908_v32, 0.0  ;;  %v4918_v12 = vadd.f32 %v4791_v57, %v1158_v56  ;;  %v4932_v56 = vpop.eup %4400 }
 0x1f6   : > { %v1319_v15 = vrot.slane %v1318_v39, 1  ;;  %v1333_v17 = vrot.slane %v1332_v40, 4  ;;  %v5765_v7 = vmax.f32 %v4914_v53, 0.0  ;;  %v1305_v20 = vmul.f32 %v4910_v35, %v5763_v42  ;;  %v4938_v43 = vpop.eup %4402 }
 0x1f7   : > { %v1329_v23 = vadd.f32 %v1328_v62, %v1327_v28  ;;  %v1343_v25 = vadd.f32 %v1342_v8, %v1341_v31  ;;  %v1303_v30 = vmul.f32 %v4870_v46, %v5766_v60  ;;  %v5767_v34 = vmax.f32 %v4918_v12, 0.0 }
 0x1f8   : > { %v1320_v44 = vadd.f32 %v1319_v15, %v1318_v39  ;;  %v1334_v18 = vadd.f32 %v1333_v17, %v1332_v40  ;;  %v1306_v0 = vmul.f32 %v4920_v14, %v5765_v7  ;;  %v4945_v8 = vsel %vm1311_vm6, %v1305_v20, 0.0  ;;  %v4949_v40 = vpop.eup %4404 }
 0x1f9   : > { %v1403_v28 = vmul.f32 %v4864_v41, %v1329_v23  ;;  %v1344_v31 = vrot.slane %v1343_v25, 2  ;;  %v1304_v62 = vmul.f32 %v4883_v1, %v5767_v34  ;;  %v4947_v39 = vpop.f32.mrb[12].mxu1  ;;  %5810 = vst [vmem:[#allocation12_spill] sm:$0xff] %v4949_v40  ;;  %v1348_v7 = vsel %vm1311_vm6, %v1303_v30, 0.0 }
 0x1fa   : > { %v1401_v15 = vmul.f32 %v4389_v59, %v1320_v44  ;;  %v1335_v17 = vrot.slane %v1334_v18, 2  ;;  %v4953_v60 = vsel %vm1311_vm6, %v1306_v0, 0.0  ;;  %v4955_v41 = vpop.f32.mrb[13].mxu1 }
 0x1fb   : > { %v1423_v23 = vrot.slane %v1403_v28, %v4729_v36  ;;  %v1668_v42 = vpack.c.bf16 %v1403_v28, %v1403_v28  ;;  %v1345_v34 = vadd.f32 %v1344_v31, %v1343_v25  ;;  %v1349_v20 = vsel %vm1311_vm6, %v1304_v62, 0.0  ;;  %v4959_v58 = vpop.f32.mrb[14].mxu1 }
 0x1fc   : > { %v1419_v37 = vrot.slane %v1401_v15, %v4729_v36  ;;  %v1667_v16 = vpack.c.bf16 %v1401_v15, %v1401_v15  ;;  %v1336_v44 = vadd.f32 %v1335_v17, %v1334_v18  ;;  %v1350_v59 = vadd.f32 %v1349_v20, %v1348_v7  ;;  %v4962_v10 = vpop.f32.mrb[15].mxu1 }
 0x1fd   : > { %v1450_v0 = vsub.f32 %v1188_v5, %v1423_v23  ;;  %v1451_v30 = vsub.f32 %v1189_v13, %v1423_v23  ;;  %v1813_v29 = vunpack.c.l.b16 %v1668_v42  ;;  %v1346_v28 = vrot.slane %v1345_v34, 1 }
 0x1fe   : > { %v5811_v25 = vmax.f32 %v4806_v2, 0.0  ;;  %v5812_v62 = vmax.f32 %v4820_v11, 0.0  ;;  %v1812_v14 = vunpack.c.l.b16 %v1667_v16  ;;  %v1337_v15 = vrot.slane %v1336_v44, 1 }
 0x1ff   : > { %v1466_v18 = vmul.f32 %v1450_v0, %v4799_v63  ;;  %v1467_v7 = vmul.f32 %v1451_v30, %v4769_v48  ;;  %v1820_v17 = vrot.slane %v1813_v29, 7  ;;  %v1347_v61 = vadd.f32 %v1346_v28, %v1345_v34 }
 0x200   : > { %v1448_v31 = vsub.f32 %v5811_v25, %v1419_v37  ;;  %v1449_v40 = vsub.f32 %v5812_v62, %v1419_v37  ;;  %v1338_v13 = vadd.f32 %v1337_v15, %v1336_v44  ;;  %v1351_v42 = vrot.slane %v1350_v59, 4 }
 0x201   : > { %v1485_v2 = vmul.f32 %v1466_v18, %v1466_v18  ;;  %v1486_v23 = vmul.f32 %v1467_v7, %v1467_v7  ;;  %v1821_v11 = vsel %vm1716_vm7, %v1820_v17, %v1812_v14  ;;  %v1407_v16 = vmul.f32 %v4897_v19, %v1347_v61 }
 0x202   : > { %v1464_v5 = vmul.f32 %v1448_v31, %v4778_v52  ;;  %v1465_v6 = vmul.f32 %v1449_v40, %v4783_v55  ;;  %v1405_v63 = vmul.f32 %v4885_v3, %v1338_v13  ;;  %v1352_v29 = vadd.f32 %v1351_v42, %v1350_v59 }
 0x203   : > { %v1508_v48 = vsel %vm1311_vm6, %v1485_v2, 0.0  ;;  %v1509_v52 = vsel %vm1311_vm6, %v1486_v23, 0.0  ;;  %v1431_v55 = vrot.slane %v1407_v16, %v4729_v36  ;;  %v1670_v34 = vpack.c.bf16 %v1407_v16, %v1407_v16 }
 0x204   : > { %v1483_v37 = vmul.f32 %v1464_v5, %v1464_v5  ;;  %v1484_v20 = vmul.f32 %v1465_v6, %v1465_v6  ;;  %v1510_v40 = vadd.f32 %v1509_v52, %v1508_v48  ;;  %v1427_v19 = vrot.slane %v1405_v63, %v4729_v36 }
 0x205   : > { %v1669_v30 = vpack.c.bf16 %v1405_v63, %v1405_v63  ;;  %v5813_v3 = vmax.f32 %v4851_v26, 0.0  ;;  %v5814_v59 = vmax.f32 %v4861_v38, 0.0  ;;  %v5815_v62 = vmax.f32 %v4857_v33, 0.0 }
 0x206   : > { %v1499_v44 = vsel %vm1311_vm6, %v1483_v37, 0.0  ;;  %v1500_v14 = vsel %vm1311_vm6, %v1484_v20, 0.0  ;;  %v1511_v31 = vrot.slane %v1510_v40, 4  ;;  %v5816_v18 = vmax.f32 %v4868_v45, 0.0 }
 0x207   : > { %v1501_v0 = vadd.f32 %v1500_v14, %v1499_v44  ;;  %v1454_v28 = vsub.f32 %v5813_v3, %v1431_v55  ;;  %v1455_v25 = vsub.f32 %v5814_v59, %v1431_v55  ;;  %v1452_v15 = vsub.f32 %v5815_v62, %v1427_v19 }
 0x208   : > { %v1453_v7 = vsub.f32 %v5816_v18, %v1427_v19  ;;  %v1815_v17 = vunpack.c.l.b16 %v1670_v34  ;;  %v1814_v5 = vunpack.c.l.b16 %v1669_v30  ;;  %v1512_v42 = vadd.f32 %v1511_v31, %v1510_v40 }
 0x209   : > { %v1502_v61 = vrot.slane %v1501_v0, 4  ;;  %v1470_v6 = vmul.f32 %v1454_v28, %v4808_v4  ;;  %v1471_v13 = vmul.f32 %v1455_v25, %v4844_v22  ;;  %v1468_v26 = vmul.f32 %v1452_v15, %v4771_v49 }
 0x20a   : > { %v1469_v38 = vmul.f32 %v1453_v7, %v4773_v50  ;;  %v1824_v2 = vrot.slane %v1815_v17, 5  ;;  %v1822_v16 = vrot.slane %v1814_v5, 6  ;;  %v1513_v20 = vrot.slane %v1512_v42, 2 }
 0x20b   : > { %v1503_v23 = vadd.f32 %v1502_v61, %v1501_v0  ;;  %v1489_v33 = vmul.f32 %v1470_v6, %v1470_v6  ;;  %v1490_v37 = vmul.f32 %v1471_v13, %v1471_v13  ;;  %v1487_v45 = vmul.f32 %v1468_v26, %v1468_v26 }
 0x20c   : > { %v1488_v63 = vmul.f32 %v1469_v38, %v1469_v38  ;;  %v1353_v48 = vrot.slane %v1352_v29, 2  ;;  %v1823_v55 = vsel %vm1719_vm8, %v1822_v16, %v1821_v11  ;;  %v1514_v34 = vadd.f32 %v1513_v20, %v1512_v42  ;;  %v5029_v16 = vpop.permute.xlu0 %1274  ;;  %v5040_v20 = vpop.permute.xlu1 %1278 }
 0x20d   : > { %v1504_v52 = vrot.slane %v1503_v23, 2  ;;  %v1526_v4 = vsel %vm1311_vm6, %v1489_v33, 0.0  ;;  %v1527_v22 = vsel %vm1311_vm6, %v1490_v37, 0.0  ;;  %v1517_v49 = vsel %vm1311_vm6, %v1487_v45, 0.0 }
 0x20e   : > { %v1518_v50 = vsel %vm1311_vm6, %v1488_v63, 0.0  ;;  %v1528_v40 = vadd.f32 %v1527_v22, %v1526_v4  ;;  %v5003_v19 = vsel %vm1722_vm9, %v1824_v2, %v1823_v55  ;;  %v1354_v0 = vadd.f32 %v1353_v48, %v1352_v29 }
 0x20f   : > { %v1505_v44 = vadd.f32 %v1504_v52, %v1503_v23  ;;  %v1519_v14 = vadd.f32 %v1518_v50, %v1517_v49  ;;  %v1515_v30 = vrot.slane %v1514_v34, 1  ;;  %v1359_v11 = vadd.f32 %v4953_v60, %v4945_v8 }
 0x210   : > { %v1529_v3 = vrot.slane %v1528_v40, 4  ;;  %v5817_v28 = vrot.slane %v4775_v51, 6  ;;  %v1355_v31 = vrot.slane %v1354_v0, 1  ;;  %v5011_v62 = vadd.f32 %v4791_v57, %v4955_v41 }
 0x211   : > { %v1506_v59 = vrot.slane %v1505_v44, 1  ;;  %v1520_v25 = vrot.slane %v1519_v14, 4  ;;  %v1516_v15 = vadd.f32 %v1515_v30, %v1514_v34  ;;  %v1360_v7 = vrot.slane %v1359_v11, 4 }
 0x212   : > { %4406 = vrcp.f32 %v5817_v28  ;;  %v1530_v18 = vadd.f32 %v1529_v3, %v1528_v40  ;;  %v5818_v29 = vrot.slane %v4775_v51, 7  ;;  %v1356_v5 = vadd.f32 %v1355_v31, %v1354_v0  ;;  %v5060_v3 = vpop.permute.xlu0 %1285 }
 0x213   : > { %v1507_v17 = vadd.f32 %v1506_v59, %v1505_v44  ;;  %v1521_v61 = vadd.f32 %v1520_v25, %v1519_v14  ;;  %v5017_v60 = vadd.f32 %v4947_v39, %v4791_v57  ;;  %v1590_v8 = vmul.f32 %v4873_v47, %v1516_v15 }
 0x214   : > { %4408 = vrcp.f32 %v5818_v29  ;;  %v1531_v6 = vrot.slane %v1530_v18, 2  ;;  %v1361_v13 = vadd.f32 %v1360_v7, %v1359_v11  ;;  %v5022_v41 = vadd.f32 %v4959_v58, %v4791_v57 }
 0x215   : > { %v1588_v42 = vmul.f32 %v4890_v9, %v1507_v17  ;;  %v1522_v26 = vrot.slane %v1521_v61, 2  ;;  %v1409_v51 = vmul.f32 %v4932_v56, %v1356_v5  ;;  %v1198_v38 = vmax.f32 %v5011_v62, 0.0 }
 0x216   : > { %v5027_v2 = vadd.f32 1e-31, %v1590_v8  ;;  %v1532_v23 = vadd.f32 %v1531_v6, %v1530_v18  ;;  %v1362_v39 = vrot.slane %v1361_v13, 2  ;;  %v5033_v47 = vadd.f32 %v4791_v57, %v4962_v10  ;;  %v5069_v18 = vpop.permute.xlu1 %1289 }
 0x217   : > { %v5035_v33 = vadd.f32 1e-31, %v1588_v42  ;;  %v1523_v58 = vadd.f32 %v1522_v26, %v1521_v61  ;;  %v1435_v9 = vrot.slane %v1409_v51, %v4729_v36  ;;  %v1671_v37 = vpack.c.bf16 %v1409_v51, %v1409_v51 }
 0x218   : > { %4410 = vrsqrt.f32 %v5027_v2  ;;  %v1576_v56 = vrot.slane %v4781_v54, 5  ;;  %v1200_v45 = vmax.f32 %v5017_v60, 0.0  ;;  %v1307_v57 = vmul.f32 %v5029_v16, %v1198_v38 }
 0x219   : > { %4412 = vrsqrt.f32 %v5035_v33  ;;  %v1524_v63 = vrot.slane %v1523_v58, 1  ;;  %v1533_v48 = vrot.slane %v1532_v23, 1  ;;  %v5819_v52 = vmax.f32 %v4908_v32, 0.0 }
 0x21a   : > { %v5820_v4 = vmax.f32 %v4918_v12, 0.0  ;;  %v1816_v34 = vunpack.c.l.b16 %v1671_v37  ;;  %v1363_v49 = vadd.f32 %v1362_v39, %v1361_v13  ;;  %v1201_v50 = vmax.f32 %v5022_v41, 0.0 }
 0x21b   : > { %v1456_v55 = vsub.f32 %v5819_v52, %v1435_v9  ;;  %v1199_v40 = vmax.f32 %v5033_v47, 0.0  ;;  %vm1620_vm11 = vcmp.eq.f32.partialorder %v5027_v2, inf  ;;  %v1525_v14 = vadd.f32 %v1524_v63, %v1523_v58 }
 0x21c   : > { %v5047_v10 = vpop.eup %4406  ;;  %v1457_v22 = vsub.f32 %v5820_v4, %v1435_v9  ;;  %v1534_v0 = vadd.f32 %v1533_v48, %v1532_v23  ;;  %vm1622_vm12 = vcmp.eq.f32.partialorder %v5027_v2, 0.0  ;;  %v1826_v12 = vrot.slane %v1816_v34, 4 }
 0x21d   : > { %v1472_v30 = vmul.f32 %v1456_v55, %v4870_v46  ;;  %v1364_v11 = vrot.slane %v1363_v49, 1  ;;  %v1366_v28 = vsel %vm1311_vm6, %v1307_v57, 0.0  ;;  %v1308_v59 = vmul.f32 %v5040_v20, %v1199_v40 }
 0x21e   : > { %v5055_v44 = vpop.eup %4408  ;;  %v1473_v32 = vmul.f32 %v1457_v22, %v4883_v1  ;;  %v1592_v25 = vmul.f32 %v4904_v27, %v1525_v14  ;;  %v1594_v31 = vmul.f32 %v4926_v21, %v1534_v0  ;;  %v1827_v1 = vsel %vm1725_vm10, %v1826_v12, %v5003_v19 }
 0x21f   : > { %v1491_v15 = vmul.f32 %v1472_v30, %v1472_v30  ;;  %v1365_v7 = vadd.f32 %v1364_v11, %v1363_v49  ;;  %v1367_v29 = vsel %vm1311_vm6, %v1308_v59, 0.0  ;;  %v1309_v17 = vmul.f32 %v5060_v3, %v1200_v45 }
 0x220   : > { %v1492_v46 = vmul.f32 %v1473_v32, %v1473_v32  ;;  %v5077_v61 = vadd.f32 1e-31, %v1592_v25  ;;  %v5079_v5 = vadd.f32 1e-31, %v1594_v31  ;;  %v1368_v19 = vadd.f32 %v1367_v29, %v1366_v28 }
 0x221   : > { %v1535_v27 = vsel %vm1311_vm6, %v1491_v15, 0.0  ;;  %v1411_v6 = vmul.f32 %v4938_v43, %v1365_v7  ;;  %v1310_v13 = vmul.f32 %v5069_v18, %v1201_v50  ;;  %vm1613_vm14 = vcmp.eq.f32.partialorder %v5035_v33, inf  ;;  %v5823_v15 = vld [vmem:[#allocation11_spill] sm:$0xff] }
 0x222   : > { %v1536_v21 = vsel %vm1311_vm6, %v1492_v46, 0.0  ;;  %v4411_v42 = vpop.eup %4410  ;;  %vm1615_vm15 = vcmp.eq.f32.partialorder %v5035_v33, 0.0  ;;  %v1623_v26 = vand.u32 2147483648, %v5027_v2  ;;  %4414 = vrsqrt.f32 %v5077_v61 }
 0x223   : > { %v1537_v8 = vadd.f32 %v1536_v21, %v1535_v27  ;;  %v4413_v51 = vpop.eup %4412  ;;  %v1616_v23 = vand.u32 2147483648, %v5035_v33  ;;  %v1619_v39 = vmul.f32 %v4411_v42, %v5027_v2  ;;  %4416 = vrsqrt.f32 %v5079_v5 }
 0x224   : > { %v1375_v43 = vsel %vm1311_vm6, %v1309_v17, 0.0  ;;  %v1612_v58 = vmul.f32 %v4413_v51, %v5035_v33  ;;  %v1630_v9 = vand.u32 2147483648, %v5077_v61  ;;  %v1439_v57 = vrot.slane %v1411_v6, %v4729_v36 }
 0x225   : > { %v1538_v37 = vrot.slane %v1537_v8, 4  ;;  %v1621_v63 = vsel %vm1620_vm11, %v5027_v2, %v1619_v39  ;;  %v1672_v48 = vpack.c.bf16 %v1411_v6, %v1411_v6  ;;  %v1369_v52 = vrot.slane %v1368_v19, 4 }
 0x226   : > { %v1376_v55 = vsel %vm1311_vm6, %v1310_v13, 0.0  ;;  %v1614_v4 = vsel %vm1613_vm14, %v5035_v33, %v1612_v58  ;;  %v1624_v22 = vsel %vm1622_vm12, %v1623_v26, %v1621_v63  ;;  %vm1627_vm0 = vcmp.eq.f32.partialorder %v5077_v61, inf }
 0x227   : > { %v1539_v34 = vadd.f32 %v1538_v37, %v1537_v8  ;;  %v5821_v49 = vmax.f32 %v4902_v24, 0.0  ;;  %v1617_v0 = vsel %vm1615_vm15, %v1616_v23, %v1614_v4  ;;  %v1684_v30 = vpack.c.bf16 %v1624_v22, %v1624_v22  ;;  %v5824_v22 = vld [vmem:[#allocation12_spill] sm:$0xff] }
 0x228   : > { %vm1629_vm1 = vcmp.eq.f32.partialorder %v5077_v61, 0.0  ;;  %v5822_v32 = vmax.f32 %v4914_v53, 0.0  ;;  %v1817_v11 = vunpack.c.l.b16 %v1672_v48  ;;  %v1683_v28 = vpack.c.bf16 %v1617_v0, %v1617_v0 }
 0x229   : > { %v1458_v14 = vsub.f32 %v5821_v49, %v1439_v57  ;;  %v1540_v59 = vrot.slane %v1539_v34, 2  ;;  %v1370_v25 = vadd.f32 %v1369_v52, %v1368_v19  ;;  %v1708_v31 = vunpack.c.l.b16 %v1684_v30 }
 0x22a   : > { %v1459_v12 = vsub.f32 %v5822_v32, %v1439_v57  ;;  %v1828_v24 = vrot.slane %v1817_v11, 3  ;;  %v1377_v7 = vadd.f32 %v1376_v55, %v1375_v43  ;;  %v1707_v29 = vunpack.c.l.b16 %v1683_v28 }
 0x22b   : > { %v1474_v2 = vmul.f32 %v1458_v14, %v4910_v35  ;;  %v1541_v33 = vadd.f32 %v1540_v59, %v1539_v34  ;;  %v1371_v27 = vrot.slane %v1370_v25, 2  ;;  %v1715_v21 = vrot.slane %v1708_v31, 7 }
 0x22c   : > { %v1475_v46 = vmul.f32 %v1459_v12, %v5823_v15  ;;  %v5118_v53 = vsel %vm1728_vm13, %v1828_v24, %v1827_v1  ;;  %v1378_v6 = vrot.slane %v1377_v7, 4  ;;  %v4415_v13 = vpop.eup %4414  ;;  %vm1634_vm2 = vcmp.eq.f32.partialorder %v5079_v5, inf }
 0x22d   : > { %v1493_v17 = vmul.f32 %v1474_v2, %v1474_v2  ;;  %v1542_v35 = vrot.slane %v1541_v33, 1  ;;  %v1372_v42 = vadd.f32 %v1371_v27, %v1370_v25  ;;  %v4417_v26 = vpop.eup %4416  ;;  %v1717_v51 = vsel %vm1716_vm7, %v1715_v21, %v1707_v29 }
 0x22e   : > { %v1494_v8 = vmul.f32 %v1475_v46, %v1475_v46  ;;  %v1626_v23 = vmul.f32 %v4415_v13, %v5077_v61  ;;  %v1379_v43 = vadd.f32 %v1378_v6, %v1377_v7  ;;  %v1633_v58 = vmul.f32 %v4417_v26, %v5079_v5 }
 0x22f   : > { %v1544_v19 = vsel %vm1311_vm6, %v1493_v17, 0.0  ;;  %v1543_v1 = vadd.f32 %v1542_v35, %v1541_v33  ;;  %v1373_v57 = vrot.slane %v1372_v42, 1  ;;  %vm1636_vm5 = vcmp.eq.f32.partialorder %v5079_v5, 0.0 }
 0x230   : > { %v1545_v39 = vsel %vm1311_vm6, %v1494_v8, 0.0  ;;  %v1628_v63 = vsel %vm1627_vm0, %v5077_v61, %v1626_v23  ;;  %v1637_v48 = vand.u32 2147483648, %v5079_v5  ;;  %v1380_v52 = vrot.slane %v1379_v43, 2 }
 0x231   : > { %v1546_v37 = vadd.f32 %v1545_v39, %v1544_v19  ;;  %v1631_v55 = vsel %vm1629_vm1, %v1630_v9, %v1628_v63  ;;  %v1635_v4 = vsel %vm1634_vm2, %v5079_v5, %v1633_v58  ;;  %v1596_v34 = vmul.f32 %v5824_v22, %v1543_v1 }
 0x232   : > { %v1685_v14 = vpack.c.bf16 %v1631_v55, %v1631_v55  ;;  %v1638_v0 = vsel %vm1636_vm5, %v1637_v48, %v1635_v4  ;;  %v1374_v30 = vadd.f32 %v1373_v57, %v1372_v42  ;;  %v1381_v32 = vadd.f32 %v1380_v52, %v1379_v43 }
 0x233   : > { %v1547_v49 = vrot.slane %v1546_v37, 4  ;;  %v1686_v12 = vpack.c.bf16 %v1638_v0, %v1638_v0  ;;  %v1607_v11 = vadd.f32 1e-31, %v1596_v34  ;;  %4418 = vrcp.f32 %v1576_v56 }
 0x234   : > { %v1709_v59 = vunpack.c.l.b16 %v1685_v14  ;;  %v1413_v61 = vmul.f32 %v5047_v10, %v1374_v30  ;;  %v1382_v9 = vrot.slane %v1381_v32, 1  ;;  %v1577_v46 = vrot.slane %v4781_v54, 6 }
 0x235   : > { %v1548_v28 = vadd.f32 %v1547_v49, %v1546_v37  ;;  %v1710_v2 = vunpack.c.l.b16 %v1686_v12  ;;  %4420 = vrsqrt.f32 %v1607_v11  ;;  %vm1731_vm7 = vcmask 1046534  }
 0x236   : > { %v1718_v5 = vrot.slane %v1709_v59, 6  ;;  %v1443_v31 = vrot.slane %v1413_v61, %v4729_v36  ;;  %v1673_v24 = vpack.c.bf16 %v1413_v61, %v1413_v61  ;;  %v1383_v7 = vadd.f32 %v1382_v9, %v1381_v32 }
 0x237   : > { %v1549_v25 = vrot.slane %v1548_v28, 2  ;;  %v1721_v15 = vrot.slane %v1710_v2, 5  ;;  %4422 = vrcp.f32 %v1577_v46  ;;  %v1644_v60 = vand.u32 2147483648, %v1607_v11 }
 0x238   : > { %v1720_v29 = vsel %vm1719_vm8, %v1718_v5, %v1717_v51  ;;  %v1460_v56 = vsub.f32 %v1198_v38, %v1443_v31  ;;  %v1461_v10 = vsub.f32 %v1199_v40, %v1443_v31  ;;  %v1818_v27 = vunpack.c.l.b16 %v1673_v24 }
 0x239   : > { %v1550_v33 = vadd.f32 %v1549_v25, %v1548_v28  ;;  %v1723_v17 = vsel %vm1722_vm9, %v1721_v15, %v1720_v29  ;;  %v1415_v21 = vmul.f32 %v5055_v44, %v1383_v7  ;;  %vm1734_vm8 = vcmask 1047559  }
 0x23a   : > { %v1476_v6 = vmul.f32 %v1460_v56, %v5029_v16  ;;  %v1477_v13 = vmul.f32 %v1461_v10, %v5040_v20  ;;  %v1830_v35 = vrot.slane %v1818_v27, 2  ;;  %vm1641_vm9 = vcmp.eq.f32.partialorder %v1607_v11, inf }
 0x23b   : > { %v1551_v8 = vrot.slane %v1550_v33, 1  ;;  %v1447_v19 = vrot.slane %v1415_v21, %v4729_v36  ;;  %v1674_v42 = vpack.c.bf16 %v1415_v21, %v1415_v21  ;;  %vm1643_vm11 = vcmp.eq.f32.partialorder %v1607_v11, 0.0 }
 0x23c   : > { %v1495_v38 = vmul.f32 %v1476_v6, %v1476_v6  ;;  %v1496_v26 = vmul.f32 %v1477_v13, %v1477_v13  ;;  %v1831_v40 = vsel %vm1731_vm7, %v1830_v35, %v5118_v53  ;;  %v1578_v49 = vrot.slane %v4781_v54, 7 }
 0x23d   : > { %v1552_v62 = vadd.f32 %v1551_v8, %v1550_v33  ;;  %v4419_v47 = vpop.eup %4418  ;;  %v1462_v44 = vsub.f32 %v1200_v45, %v1447_v19  ;;  %v1463_v16 = vsub.f32 %v1201_v50, %v1447_v19  ;;  %v1819_v20 = vunpack.c.l.b16 %v1674_v42 }
 0x23e   : > { %v1553_v23 = vsel %vm1311_vm6, %v1495_v38, 0.0  ;;  %v1554_v36 = vsel %vm1311_vm6, %v1496_v26, 0.0  ;;  %vm1905_vm2 = vcmask 31744  }
 0x23f   : > { %v1598_v51 = vmul.f32 %v4419_v47, %v1552_v62  ;;  %v4421_v39 = vpop.eup %4420  ;;  %v1555_v43 = vadd.f32 %v1554_v36, %v1553_v23  ;;  %v1478_v58 = vmul.f32 %v1462_v44, %v5060_v3  ;;  %v1479_v1 = vmul.f32 %v1463_v16, %v5069_v18 }
 0x240   : > { %v1832_v53 = vrot.slane %v1819_v20, 1  ;;  %v1640_v37 = vmul.f32 %v4421_v39, %v1607_v11 }
 0x241   : > { %v1608_v45 = vadd.f32 1e-31, %v1598_v51  ;;  %v1556_v41 = vrot.slane %v1555_v43, 4  ;;  %v1497_v50 = vmul.f32 %v1478_v58, %v1478_v58  ;;  %v1498_v57 = vmul.f32 %v1479_v1, %v1479_v1  ;;  %v4423_v0 = vpop.eup %4422  ;;  %v1904_v58 = vld [vmem:[%s5825_s3] sm:$0x3]  ;;  %s5682_s3 = scalar_lea.hbm %s5751_s27, %s4693_s5 }
 0x242   : > { %v1833_v63 = vsel %vm1734_vm8, %v1832_v53, %v1831_v40  ;;  %v1642_v48 = vsel %vm1641_vm9, %v1607_v11, %v1640_v37 }
 0x243   : > { %4424 = vrsqrt.f32 %v1608_v45  ;;  %v1645_v52 = vsel %vm1643_vm11, %v1644_v60, %v1642_v48  ;;  %v1557_v55 = vadd.f32 %v1556_v41, %v1555_v43  ;;  %v1562_v4 = vsel %vm1311_vm6, %v1497_v50, 0.0  ;;  %v4262_v50 = vld [vmem:[%s5828_s2 + $0x40] sm:$0xff]   ;;  %v4265_v48 = vld [vmem:[%s5828_s2 + $0x48] sm:$0xff]  }
 0x244   : > { %v1687_v3 = vpack.c.bf16 %v1645_v52, %v1645_v52  ;;  %v1563_v18 = vsel %vm1311_vm6, %v1498_v57, 0.0  ;;  %v1834_v22 = vpack.c.b16 %v1833_v63, %v1833_v63  ;;  %4426 = vrcp.f32 %v1578_v49  ;;  %v4263_v57 = vld [vmem:[%s5828_s2] sm:$0xff]   ;;  %3868 = vmatprep.subr.bf16.mxu1 %v4262_v50  ;;  %v4267_v52 = vld [vmem:[%s5828_s2 + $0x88] sm:$0xff]   ;;  %v4273_v49 = vld [vmem:[%s5828_s2 + $0x98] sm:$0xff]  }
 0x245   : > { %v1558_v34 = vrot.slane %v1557_v55, 2  ;;  %v1564_v14 = vadd.f32 %v1563_v18, %v1562_v4  ;;  %vm1648_vm12 = vcmp.eq.f32.partialorder %v1608_v45, inf  ;;  %v1651_v54 = vand.u32 2147483648, %v1608_v45  ;;  %v4264_v63 = vld [vmem:[%s5828_s2 + $0x80] sm:$0xff]   ;;  %v4268_v4 = vld [vmem:[%s5828_s2 + $0x50] sm:$0xff]  }
 0x246   : > { %v1711_v30 = vunpack.c.l.b16 %v1687_v3  ;;  %4086 = vmatmul.mubr.msk.bf16.vlgmr.msra.gmra.mrb[16].mxu1 %vm1311_vm6, %v1834_v22  ;;  %vm1650_vm14 = vcmp.eq.f32.partialorder %v1608_v45, 0.0  ;;  %v5827_v60 = vmov 0.0   ;;  %v4270_v3 = vld [vmem:[%s5828_s2 + $0x90] sm:$0xff]   ;;  %v4271_v22 = vld [vmem:[%s5828_s2 + $0x58] sm:$0xff]   ;;  %vm2351_vm11 = vcmask 785408  }
 0x247   : > { %v1559_v32 = vadd.f32 %v1558_v34, %v1557_v55  ;;  %v1565_v12 = vrot.slane %v1564_v14, 4  ;;  %3869 = vmatpush3.bf16.msra.mxu1 %v4263_v57  ;;  %v4266_v55 = vld [vmem:[%s5828_s2 + $0x8] sm:$0xff]   ;;  %v4269_v18 = vld [vmem:[%s5828_s2 + $0x10] sm:$0xff]   ;;  %v4272_v34 = vld [vmem:[%s5828_s2 + $0x18] sm:$0xff]  }
 0x248   : > { %v1724_v11 = vrot.slane %v1711_v30, 4  ;;  %3870 = vmatprep.subr.bf16.mxu1 %v4265_v48  ;;  %v4276_v30 = vld [vmem:[%s5828_s2 + $0xa0] sm:$0xff]  }
 0x249   : > { %v1560_v28 = vrot.slane %v1559_v32, 1  ;;  %v1566_v59 = vadd.f32 %v1565_v12, %v1564_v14  ;;  %v4274_v14 = vld [vmem:[%s5828_s2 + $0x60] sm:$0xff]   ;;  %v4278_v12 = vld [vmem:[%s5828_s2 + $0x28] sm:$0xff]  }
 0x24a   : > { %v1726_v61 = vsel %vm1725_vm10, %v1724_v11, %v1723_v17  ;;  %v4279_v11 = vld [vmem:[%s5828_s2 + $0xa8] sm:$0xff]  }
 0x24b   : > { %v1561_v9 = vadd.f32 %v1560_v28, %v1559_v32  ;;  %v1567_v2 = vrot.slane %v1566_v59, 2  ;;  %3871 = vmatpush3.bf16.msra.mxu1 %v4266_v55  ;;  %v4277_v32 = vld [vmem:[%s5828_s2 + $0x68] sm:$0xff]   ;;  %v4280_v28 = vld [vmem:[%s5828_s2 + $0x70] sm:$0xff]  }
 0x24c   : > { %3872 = vmatprep.subr.bf16.mxu1 %v4268_v4 }
 0x24d   : > { %v4425_v5 = vpop.eup %4424  ;;  %v1600_v31 = vmul.f32 %v4423_v0, %v1561_v9  ;;  %v1568_v15 = vadd.f32 %v1567_v2, %v1566_v59  ;;  %v4275_v0 = vld [vmem:[%s5828_s2 + $0x20] sm:$0xff]   ;;  %v4281_v59 = vld [vmem:[%s5828_s2 + $0x30] sm:$0xff]   ;;  %v4283_v9 = vld [vmem:[%s5828_s2 + $0x78] sm:$0xff]  }
 0x24e   : > { %v1647_v25 = vmul.f32 %v4425_v5, %v1608_v45  ;;  %v4427_v10 = vpop.eup %4426  ;;  %v4284_v2 = vld [vmem:[%s5828_s2 + $0x38] sm:$0xff]  }
 0x24f   : > { %v1609_v24 = vadd.f32 1e-31, %v1600_v31  ;;  %v1569_v7 = vrot.slane %v1568_v15, 1  ;;  %3873 = vmatpush3.bf16.msra.mxu1 %v4269_v18  ;;  %v4285_v5 = vld [vmem:[%s5828_s2 + $0xb8] sm:$0xff]  }
 0x250   : > { %v1649_v46 = vsel %vm1648_vm12, %v1608_v45, %v1647_v25  ;;  %v1902_v45 = vld [vmem:[%s851_s11] sm:$0xff]  ;;  %3874 = vmatprep.subr.bf16.mxu1 %v4271_v22  ;;  %s5836_s11 = smov 64  }
 0x251   : > { %v1652_v29 = vsel %vm1650_vm14, %v1651_v54, %v1649_v46  ;;  %4428 = vrsqrt.f32 %v1609_v24  ;;  %v1570_v56 = vadd.f32 %v1569_v7, %v1568_v15  ;;  %vm1655_vm10 = vcmp.eq.f32.partialorder %v1609_v24, inf }
 0x252   : > { %v1688_v33 = vpack.c.bf16 %v1652_v29, %v1652_v29  ;;  %v1658_v19 = vand.u32 2147483648, %v1609_v24  ;;  %vm1657_vm15 = vcmp.eq.f32.partialorder %v1609_v24, 0.0  ;;  %v1903_v41 = vpack.c.bf16 %v1902_v45, %v1902_v45 }
 0x253   : > { %v1602_v21 = vmul.f32 %v4427_v10, %v1570_v56  ;;  %3875 = vmatpush3.bf16.msra.mxu1 %v4272_v34  ;;  %v3698_v10 = vld [vmem:[%s5829_s9] ss:$0 sm:$0xff]  ;;  %s836_s9 = sand.u32 1, %s4486_s4  }
 0x254   : > { %v1712_v27 = vunpack.c.l.b16 %v1688_v33  ;;  %3876 = vmatprep.subr.bf16.mxu1 %v4274_v14  ;;  %s3566_s29 = scalar_lea.sflag [#allocation3], %s836_s9 }
 0x255   : > { %v1610_v8 = vadd.f32 1e-31, %v1602_v21 }
 0x256   : > { %v1727_v17 = vrot.slane %v1712_v27, 3  ;;  %v5830_v27 = vld [vmem:[#allocation10_spill] sm:$0xff] }
 0x257   : > { %4430 = vrsqrt.f32 %v1610_v8  ;;  %vm1662_vm0 = vcmp.eq.f32.partialorder %v1610_v8, inf  ;;  %v1665_v16 = vand.u32 2147483648, %v1610_v8  ;;  %vm1664_vm1 = vcmp.eq.f32.partialorder %v1610_v8, 0.0  ;;  %3877 = vmatpush3.bf16.msra.mxu1 %v4275_v0 }
 0x258   : > { %v1729_v6 = vsel %vm1728_vm13, %v1727_v17, %v1726_v61  ;;  %vm1909_vm13 = vcmask 1041408   ;;  %3878 = vmatprep.subr.bf16.mxu1 %v4277_v32  ;;  %v4282_v61 = vld [vmem:[%s5828_s2 + $0xb0] sm:$0xff]   ;;  %v1969_v21 = vand.u32 7, %v5830_v27  ;;  %v4292_v32 = vld [vmem:[%s5739_s15] sm:$0xff]   ;;  %s5835_s2 = smov 32  }
 0x259   : > { %v1911_v37 = vsel %vm1909_vm13, %v1904_v58, 0  ;;  %v4291_v58 = vld [vmem:[%s5737_s13 + $0x28] sm:$0xff]   ;;  %v4308_v27 = vld [vmem:[%s5741_s17 + $0x10] sm:$0xff]  }
 0x25a   : > { %vm5270_vm5 = vcmp.ne.s32.totalorder %v1969_v21, 0 }
 0x25b   : > { %v4429_v13 = vpop.eup %4428  ;;  %3879 = vmatpush3.bf16.msra.mxu1 %v4278_v12  ;;  %v4293_v12 = vld [vmem:[%s5739_s15 + $0x8] sm:$0xff]  }
 0x25c   : > { %v1654_v35 = vmul.f32 %v4429_v13, %v1609_v24  ;;  %3880 = vmatprep.subr.bf16.mxu1 %v4280_v28  ;;  %v4295_v28 = vld [vmem:[%s5739_s15 + $0x18] sm:$0xff]  }
 0x25e   : > { %v1656_v42 = vsel %vm1655_vm10, %v1609_v24, %v1654_v35 }
 0x25f   : > { %v1659_v62 = vsel %vm1657_vm15, %v1658_v19, %v1656_v42  ;;  %3881 = vmatpush3.bf16.msra.mxu1 %v4281_v59  ;;  %v4296_v59 = vld [vmem:[%s5739_s15 + $0x20] sm:$0xff]   ;;  %v4305_v19 = vld [vmem:[%s5741_s17 + $0x88] sm:$0xff]  }
 0x260   : > { %v1689_v38 = vpack.c.bf16 %v1659_v62, %v1659_v62  ;;  %3882 = vmatprep.subr.bf16.mxu1 %v4283_v9  ;;  %v3730_v9 = vld [vmem:[%s5738_s14] ss:$0 sm:$0xff] }
 0x261   : > { %v4431_v26 = vpop.eup %4430 }
 0x262   : > { %v1713_v47 = vunpack.c.l.b16 %v1689_v38  ;;  %v1661_v40 = vmul.f32 %v4431_v26, %v1610_v8 }
 0x263   : > { %3883 = vmatpush3.bf16.msra.mxu1 %v4284_v2  ;;  %v4298_v2 = vld [vmem:[%s5741_s17 + $0x40] sm:$0xff]  }
 0x264   : > { %v1730_v44 = vrot.slane %v1713_v47, 2  ;;  %v1663_v20 = vsel %vm1662_vm0, %v1610_v8, %v1661_v40  ;;  %4115 = vmatprep.subr.bf16.mxu1 %v5827_v60 }
 0x265   : > { %v1666_v23 = vsel %vm1664_vm1, %v1665_v16, %v1663_v20  ;;  %v4286_v16 = vld [vmem:[%s5737_s13] sm:$0xff]   ;;  %v4287_v20 = vld [vmem:[%s5737_s13 + $0x8] sm:$0xff]  }
 0x266   : > { %v1732_v51 = vsel %vm1731_vm7, %v1730_v44, %v1729_v6  ;;  %v1690_v36 = vpack.c.bf16 %v1666_v23, %v1666_v23  ;;  %vm5274_vm7 = vcmp.ne.s32.totalorder %v1969_v21, 7  ;;  %v4289_v23 = vld [vmem:[%s5737_s13 + $0x18] sm:$0xff]  }
 0x267   : > { %vm3727_vm9 = vmpackc.low %vm5274_vm7, %vm5274_vm7 }
 0x268   : > { %v1714_v39 = vunpack.c.l.b16 %v1690_v36  ;;  %v4290_v36 = vld [vmem:[%s5737_s13 + $0x20] sm:$0xff]  }
 0x26a   : > { %v1733_v43 = vrot.slane %v1714_v39, 1 }
 0x26c   : > { %v1735_v1 = vsel %vm1734_vm8, %v1733_v43, %v1732_v51  ;;  %vm3724_vm8 = vmpackc.low %vm5270_vm5, %vm5270_vm5  ;;  %v4288_v51 = vld [vmem:[%s5737_s13 + $0x10] sm:$0xff]  }
 0x26d   : > { %v1736_v53 = vpack.c.b16 %v1735_v1, %v1735_v1  ;;  %v3699_v1 = vld [vmem:[%s5736_s12] ss:$0 sm:$0xff] }
 0x26f   : > { %4074 = vmatmul.mubr.msk.bf16.vlgmr.msra.gmra.mrb[16].mxu0 %vm1311_vm6, %v1736_v53 }
 0x270   : > { %4090 = vmatpush3.bf16.msra.mxu0 %v1911_v37  ;;  %4091 = vmatprep.mubr.msk.bf16.mxu0 %vm4497_vm4, %v5827_v60 }
 0x271   : > { %4095 = vmatprep.subr.bf16.mxu0 %v5827_v60 }
 0x277   : > { %4092 = vmatmul.mubr.msk.bf16.vlgmr.msra.gmra.mrb[20].mxu0 %vm1905_vm2, %v1903_v41 }
 0x278   : > { %4111 = vmatprep.mubr.msk.bf16.mxu0 %vm4497_vm4, %v5827_v60  ;;  %4096 = vmatpush3.bf16.msra.mxu0 %v4264_v63 }
 0x279   : > { %4097 = vmatprep.subr.bf16.mxu0 %v5827_v60 }
 0x27c   : > { %4098 = vmatpush3.bf16.msra.mxu0 %v4267_v52 }
 0x27d   : > { %4099 = vmatprep.subr.bf16.mxu0 %v5827_v60 }
 0x280   : > { %4100 = vmatpush3.bf16.msra.mxu0 %v4270_v3 }
 0x281   : > { %4101 = vmatprep.subr.bf16.mxu0 %v5827_v60 }
 0x284   : > { %4102 = vmatpush3.bf16.msra.mxu0 %v4273_v49 }
 0x285   : > { %4103 = vmatprep.subr.bf16.mxu0 %v5827_v60 }
 0x288   : > { %4104 = vmatpush3.bf16.msra.mxu0 %v4276_v30 }
 0x289   : > { %4105 = vmatprep.subr.bf16.mxu0 %v5827_v60 }
 0x28c   : > { %4106 = vmatpush3.bf16.msra.mxu0 %v4279_v11  ;;  %v4294_v11 = vld [vmem:[%s5739_s15 + $0x10] sm:$0xff]  }
 0x28d   : > { %4107 = vmatprep.subr.bf16.mxu0 %v5827_v60 }
 0x290   : > { %4108 = vmatpush3.bf16.msra.mxu0 %v4282_v61  ;;  %v4297_v61 = vld [vmem:[%s5739_s15 + $0x28] sm:$0xff]  }
 0x291   : > { %4109 = vmatprep.subr.bf16.mxu0 %v5827_v60 }
 0x294   : > { %4110 = vmatpush3.bf16.msra.mxu0 %v4285_v5  ;;  %v4299_v5 = vld [vmem:[%s5741_s17 + $0xc0] sm:$0xff]  }
 0x295   : > { %4131 = vmatprep.subr.bf16.mxu0 %v5827_v60 }
 0x319   : > { %v1896_v25 = vpop.f32.mrb[16].mxu1 }
 0x31a   : > { %v4087_v31 = vpop.f32.mrb[17].mxu1 }
 0x31b   : > { %v1899_v15 = vpop.f32.mrb[18].mxu1  ;;  %v4302_v31 = vld [vmem:[%s5741_s17 + $0x48] sm:$0xff]  }
 0x31c   : > { %v4088_v54 = vpop.f32.mrb[19].mxu1 }
 0x342   : > { %v1798_v46 = vpop.f32.mrb[16].mxu0 }
 0x343   : > { %v1897_v24 = vadd.f32 %v1896_v25, %v1798_v46  ;;  %v4075_v7 = vpop.f32.mrb[17].mxu0  ;;  %v4300_v25 = vld [vmem:[%s5741_s17] sm:$0xff]  }
 0x344   : > { %v1801_v29 = vpop.f32.mrb[18].mxu0 }
 0x345   : > { %v4076_v33 = vpop.f32.mrb[19].mxu0 }
 0x34a   : > { %v1947_v56 = vpop.f32.mrb[20].mxu0 }
 0x34b   : > { %v1953_v17 = vadd.f32 %v1947_v56, %v1897_v24  ;;  %v4093_v8 = vpop.f32.mrb[21].mxu0  ;;  %v4304_v24 = vld [vmem:[%s5741_s17 + $0x8] sm:$0xff]   ;;  %v4306_v56 = vld [vmem:[%s5741_s17 + $0x50] sm:$0xff]  }
 0x34c   : > { %v1950_v6 = vpop.f32.mrb[22].mxu0  ;;  %v4312_v8 = vld [vmem:[%s5741_s17 + $0x18] sm:$0xff]  }
 0x34d   : > { %v1961_v13 = vadd.f32 %v3698_v10, %v1953_v17  ;;  %v4094_v35 = vpop.f32.mrb[23].mxu0  ;;  %v4310_v17 = vld [vmem:[%s5741_s17 + $0x58] sm:$0xff]   ;;  %v4314_v6 = vld [vmem:[%s5741_s17 + $0x60] sm:$0xff]  }
 0x34e   : > { %v4318_v35 = vld [vmem:[%s5741_s17 + $0x68] sm:$0xff]  }
 0x34f   : > { %v1962_v42 = vmax.f32 %v1961_v13, 0.0  ;;  %v4316_v13 = vld [vmem:[%s5741_s17 + $0x20] sm:$0xff]  }
 0x351   : > { %v1980_v38 = vrot.slane %v1962_v42, 7  ;;  %v1987_v26 = vrot.slane %v1962_v42, 1  ;;  %v1995_v47 = vpack.c.bf16 %v1962_v42, %v1962_v42  ;;  %v4320_v42 = vld [vmem:[%s5741_s17 + $0x28] sm:$0xff]  }
 0x353   : > { %v3725_v40 = vpack.c.bf16 %v1980_v38, %v1980_v38  ;;  %v3728_v44 = vpack.c.bf16 %v1987_v26, %v1987_v26  ;;  %2228 = vmatprep.mubr.bf16.mxu1 %v1995_v47 }
 0x355   : > { %3726 = vmatmul.mubr.msk.bf16.vlgmr.msra.gmra.mrb[20].mxu1 %vm3724_vm8, %v3725_v40  ;;  %4112 = vmatmul.mubr.msk.bf16.vlgmr.msra.gmra.mrb[24].mxu0 %vm3727_vm9, %v3728_v44 }
 0x356   : > { %4127 = vmatprep.mubr.msk.bf16.mxu1 %vm4497_vm4, %v5827_v60  ;;  %4143 = vmatprep.mubr.msk.bf16.mxu0 %vm4497_vm4, %v5827_v60 }
 0x357   : > { %4116 = vmatpush3.bf16.msra.mxu1 %v4286_v16  ;;  %4132 = vmatpush3.bf16.msra.mxu0 %v4292_v32  ;;  %v4301_v16 = vld [vmem:[%s5741_s17 + $0x80] sm:$0xff]  }
 0x358   : > { %4117 = vmatprep.subr.bf16.mxu1 %v5827_v60  ;;  %4133 = vmatprep.subr.bf16.mxu0 %v5827_v60 }
 0x35b   : > { %4118 = vmatpush3.bf16.msra.mxu1 %v4287_v20  ;;  %4134 = vmatpush3.bf16.msra.mxu0 %v4293_v12 }
 0x35c   : > { %4119 = vmatprep.subr.bf16.mxu1 %v5827_v60  ;;  %4135 = vmatprep.subr.bf16.mxu0 %v5827_v60 }
 0x35f   : > { %4120 = vmatpush3.bf16.msra.mxu1 %v4288_v51  ;;  %4136 = vmatpush3.bf16.msra.mxu0 %v4294_v11  ;;  %v4303_v51 = vld [vmem:[%s5741_s17 + $0xc8] sm:$0xff]  }
 0x360   : > { %4121 = vmatprep.subr.bf16.mxu1 %v5827_v60  ;;  %4137 = vmatprep.subr.bf16.mxu0 %v5827_v60 }
 0x363   : > { %4122 = vmatpush3.bf16.msra.mxu1 %v4289_v23  ;;  %4138 = vmatpush3.bf16.msra.mxu0 %v4295_v28  ;;  %v4307_v23 = vld [vmem:[%s5741_s17 + $0xd0] sm:$0xff]  }
 0x364   : > { %4123 = vmatprep.subr.bf16.mxu1 %v5827_v60  ;;  %4139 = vmatprep.subr.bf16.mxu0 %v5827_v60 }
 0x367   : > { %4124 = vmatpush3.bf16.msra.mxu1 %v4290_v36  ;;  %4140 = vmatpush3.bf16.msra.mxu0 %v4296_v59  ;;  %v4309_v36 = vld [vmem:[%s5741_s17 + $0x90] sm:$0xff]  }
 0x368   : > { %4125 = vmatprep.subr.bf16.mxu1 %v5827_v60  ;;  %4141 = vmatprep.subr.bf16.mxu0 %v5827_v60 }
 0x36b   : > { %4126 = vmatpush3.bf16.msra.mxu1 %v4291_v58  ;;  %4142 = vmatpush3.bf16.msra.mxu0 %v4297_v61  ;;  %v4315_v58 = vld [vmem:[%s5741_s17 + $0xe0] sm:$0xff]  }
 0x36c   : > { %3913 = vmatprep.subr.bf16.mxu1 %v4298_v2  ;;  %3935 = vmatprep.subr.bf16.mxu0 %v4299_v5  ;;  %v4332_v5 = vld [vmem:[%s5741_s17 + $0x100] sm:$0xff]  }
 0x428   : > { %v3884_v39 = vpop.f32.mrb[20].mxu1  ;;  %v2270_v43 = vpop.f32.mrb[24].mxu0 }
 0x429   : > { %v3885_v53 = vpop.f32.mrb[21].mxu1  ;;  %v4113_v37 = vpop.f32.mrb[25].mxu0 }
 0x42a   : > { %v3886_v45 = vadd.f32 %v3885_v53, %v3884_v39  ;;  %v3887_v41 = vpop.f32.mrb[22].mxu1  ;;  %v2273_v50 = vpop.f32.mrb[26].mxu0  ;;  %v4311_v39 = vld [vmem:[%s5741_s17 + $0xd8] sm:$0xff]   ;;  %v4319_v53 = vld [vmem:[%s5741_s17 + $0xe8] sm:$0xff]  }
 0x42b   : > { %v3888_v57 = vpop.f32.mrb[23].mxu1  ;;  %v4114_v63 = vpop.f32.mrb[27].mxu0  ;;  %v4321_v37 = vld [vmem:[%s5741_s17 + $0xa8] sm:$0xff]   ;;  %v4323_v41 = vld [vmem:[%s5741_s17 + $0xf0] sm:$0xff]  }
 0x42c   : > { %v2231_v48 = vadd.f32 %v3886_v45, %v3699_v1  ;;  %v4317_v1 = vld [vmem:[%s5741_s17 + $0xa0] sm:$0xff]   ;;  %v4322_v45 = vld [vmem:[%s5741_s17 + $0x70] sm:$0xff]   ;;  %v4326_v63 = vld [vmem:[%s5741_s17 + $0x78] sm:$0xff]  }
 0x42d   : > { %v4324_v50 = vld [vmem:[%s5741_s17 + $0x30] sm:$0xff]  }
 0x42e   : > { %v2271_v52 = vadd.f32 %v2270_v43, %v2231_v48  ;;  %v4313_v43 = vld [vmem:[%s5741_s17 + $0x98] sm:$0xff]   ;;  %v4325_v57 = vld [vmem:[%s5741_s17 + $0xb0] sm:$0xff]  }
 0x42f   : > { %v4327_v48 = vld [vmem:[%s5741_s17 + $0xf8] sm:$0xff]  }
 0x430   : > { %v2276_v55 = vmax.f32 %v2271_v52, 0.0  ;;  %v4328_v52 = vld [vmem:[%s5741_s17 + $0x38] sm:$0xff]  }
 0x432   : > { %2286 = vrot.lane.b32.xlu0 %v2276_v55, %s5779_s0  ;;  %v2282_v4 = vrot.slane %v2276_v55, 1  ;;  %v2278_v18 = vrot.slane %v2276_v55, 7  ;;  %v4329_v55 = vld [vmem:[%s5741_s17 + $0xb8] sm:$0xff]   ;;  %s4438_s0 = scalar_lea.vmem %s4437_s28, 32 }
 0x434   : > { %v2285_v3 = vsel %vm5274_vm7, %v2282_v4, 0.0  ;;  %v2281_v34 = vsel %vm5270_vm5, %v2278_v18, 0.0  ;;  %v4330_v4 = vld [vmem:[%s5741_s17 + $0x140] sm:$0xff]  }
 0x435   : > { %2290 = vrot.lane.b32.xlu1 %v2285_v3, %s5778_s7  ;;  %v4331_v3 = vld [vmem:[%s5741_s17 + $0x1c0] sm:$0xff]   ;;  %s837_s7 = scalar_lea.vmem [#allocation2], %s836_s9 }
 0x436   : > { %v3738_v18 = vld [vmem:[%s5740_s16] ss:$0 sm:$0xff] }
 0x4a4   : > { %v2287_v22 = vpop.permute.xlu0 %2286 }
 0x4a5   : > { %v2293_v49 = vsel %vm1064_vm3, %v2281_v34, %v2287_v22 }
 0x4a7   : > { %v2291_v14 = vpop.permute.xlu1 %2290 }
 0x4a8   : > { %v2294_v0 = vsel %vm1311_vm6, %v2293_v49, %v2291_v14 }
 0x4a9   : > { %v2295_v30 = vpack.c.bf16 %v2294_v0, %v2294_v0 }
 0x4ab   : > { %4128 = vmatmul.mubr.msk.bf16.vlgmr.msra.gmra.mrb[24].mxu1 %vm2351_vm11, %v2295_v30 }
 0x4ac   : > { %3914 = vmatpush3.bf16.msra.mxu1 %v4300_v25  ;;  %v4333_v25 = vld [vmem:[%s5741_s17 + $0x180] sm:$0xff]  }
 0x4ad   : > { %3915 = vmatprep.subr.bf16.mxu1 %v4302_v31 }
 0x4b0   : > { %3916 = vmatpush3.bf16.msra.mxu1 %v4304_v24 }
 0x4b1   : > { %3917 = vmatprep.subr.bf16.mxu1 %v4306_v56  ;;  %v4339_v56 = vld [vmem:[%s5741_s17 + $0x1d0] sm:$0xff]  }
 0x4b4   : > { %3918 = vmatpush3.bf16.msra.mxu1 %v4308_v27  ;;  %v4341_v27 = vld [vmem:[%s5741_s17 + $0x190] sm:$0xff]  }
 0x4b5   : > { %3919 = vmatprep.subr.bf16.mxu1 %v4310_v17  ;;  %v4343_v17 = vld [vmem:[%s5741_s17 + $0x1d8] sm:$0xff]  }
 0x4b8   : > { %3920 = vmatpush3.bf16.msra.mxu1 %v4312_v8  ;;  %v4344_v8 = vld [vmem:[%s5741_s17 + $0x118] sm:$0xff]  }
 0x4b9   : > { %3921 = vmatprep.subr.bf16.mxu1 %v4314_v6  ;;  %v4345_v6 = vld [vmem:[%s5741_s17 + $0x198] sm:$0xff]  }
 0x4bc   : > { %3922 = vmatpush3.bf16.msra.mxu1 %v4316_v13  ;;  %v4346_v13 = vld [vmem:[%s5741_s17 + $0x160] sm:$0xff]  }
 0x4bd   : > { %3923 = vmatprep.subr.bf16.mxu1 %v4318_v35  ;;  %v4347_v35 = vld [vmem:[%s5741_s17 + $0x1e0] sm:$0xff]  }
 0x4c0   : > { %3924 = vmatpush3.bf16.msra.mxu1 %v4320_v42  ;;  %v4348_v42 = vld [vmem:[%s5741_s17 + $0x120] sm:$0xff]  }
 0x4c1   : > { %3925 = vmatprep.subr.bf16.mxu1 %v4322_v45  ;;  %v4363_v45 = vld [vmem:[%s5743_s19 + $0x8] sm:$0xff]  }
 0x4c4   : > { %3926 = vmatpush3.bf16.msra.mxu1 %v4324_v50  ;;  %v4365_v50 = vld [vmem:[%s5743_s19 + $0x18] sm:$0xff]  }
 0x4c5   : > { %3927 = vmatprep.subr.bf16.mxu1 %v4326_v63  ;;  %v4367_v63 = vld [vmem:[%s5743_s19 + $0x28] sm:$0xff]  }
 0x4c8   : > { %3928 = vmatpush3.bf16.msra.mxu1 %v4328_v52  ;;  %v4369_v52 = vld [vmem:[%s5743_s19 + $0x38] sm:$0xff]  }
 0x4c9   : > { %3957 = vmatprep.subr.bf16.mxu1 %v4330_v4  ;;  %v4371_v4 = vld [vmem:[%s5745_s21 + $0x8] sm:$0xff]  }
 0x57e   : > { %v2389_v15 = vpop.f32.mrb[24].mxu1 }
 0x57f   : > { %v2390_v54 = vadd.f32 %v3730_v9, %v2389_v15  ;;  %v4129_v46 = vpop.f32.mrb[25].mxu1  ;;  %v4334_v15 = vld [vmem:[%s5741_s17 + $0x148] sm:$0xff]  }
 0x580   : > { %v2392_v7 = vpop.f32.mrb[26].mxu1 }
 0x581   : > { %v2395_v29 = vmax.f32 %v2390_v54, 0.0  ;;  %v4130_v33 = vpop.f32.mrb[27].mxu1  ;;  %v4335_v54 = vld [vmem:[%s5741_s17 + $0x1c8] sm:$0xff]  }
 0x582   : > { %v4336_v7 = vld [vmem:[%s5741_s17 + $0x108] sm:$0xff]   ;;  %v4338_v33 = vld [vmem:[%s5741_s17 + $0x150] sm:$0xff]  }
 0x583   : > { %2405 = vrot.lane.b32.xlu0 %v2395_v29, %s5835_s2  ;;  %v2401_v10 = vrot.slane %v2395_v29, 1  ;;  %v2397_v62 = vrot.slane %v2395_v29, 7  ;;  %v4337_v29 = vld [vmem:[%s5741_s17 + $0x188] sm:$0xff]   ;;  %s3578_s2 = sshll.u32 %s837_s7, 4  ;;  %s5684_s2 = int_to_ptr.vmem [resolvable:$true] %s3578_s2 }
 0x584   : > { %p4439_p1 = scmp.lt.s32.totalorder %s5684_s2, %s4437_s28 }
 0x585   : > { %v2404_v21 = vsel %vm5274_vm7, %v2401_v10, 0.0  ;;  %v2400_v26 = vsel %vm5270_vm5, %v2397_v62, 0.0  ;;  %v4340_v10 = vld [vmem:[%s5741_s17 + $0x110] sm:$0xff]   ;;  %v4349_v62 = vld [vmem:[%s5741_s17 + $0x1a0] sm:$0xff]  }
 0x586   : > { %2409 = vrot.lane.b32.xlu1 %v2404_v21, %s5836_s11  ;;  %v4342_v21 = vld [vmem:[%s5741_s17 + $0x158] sm:$0xff]   ;;  %s4432_s11 = scalar_lea.vmem %s5684_s2, 16 }
 0x587   : > { %p4433_p12 = scmp.ne.s32.totalorder %s5684_s2, %s4432_s11  ;;  %p4440_p2 = scmp.lt.s32.totalorder %s4438_s0, %s4432_s11 }
 0x589   : > { %p4434_p13 = pnand %p4433_p12, %p4679_p5  ;;  %p4441_p3 = por %p4440_p2, %p4439_p1 }
 0x58b   : > { %p4435_p0 = pneg %p4434_p13 }
 0x58d   : > { %p4442_p4 = pnand %p4441_p3, %p4435_p0 }
 0x5f5   : > { %v2406_v38 = vpop.permute.xlu0 %2405 }
 0x5f6   : > { %v2412_v47 = vsel %vm1064_vm3, %v2400_v26, %v2406_v38  ;;  %v4350_v38 = vld [vmem:[%s5741_s17 + $0x168] sm:$0xff]  }
 0x5f7   : > { %v4351_v26 = vld [vmem:[%s5741_s17 + $0x1e8] sm:$0xff]  }
 0x5f8   : > { %v2410_v40 = vpop.permute.xlu1 %2409 }
 0x5f9   : > { %v2413_v44 = vsel %vm1311_vm6, %v2412_v47, %v2410_v40  ;;  %v4352_v47 = vld [vmem:[%s5741_s17 + $0x128] sm:$0xff]  }
 0x5fa   : > { %v2414_v20 = vpack.c.bf16 %v2413_v44, %v2413_v44  ;;  %v4353_v40 = vld [vmem:[%s5741_s17 + $0x1a8] sm:$0xff]   ;;  %v4354_v44 = vld [vmem:[%s5741_s17 + $0x170] sm:$0xff]  }
 0x5fc   : > { %4144 = vmatmul.mubr.msk.bf16.vlgmr.msra.gmra.mrb[28].mxu0 %vm2351_vm11, %v2414_v20  ;;  %v4356_v20 = vld [vmem:[%s5741_s17 + $0x130] sm:$0xff]  }
 0x5fd   : > { %3936 = vmatpush3.bf16.msra.mxu0 %v4301_v16  ;;  %v4355_v16 = vld [vmem:[%s5741_s17 + $0x1f0] sm:$0xff]  }
 0x5fe   : > { %3937 = vmatprep.subr.bf16.mxu0 %v4303_v51  ;;  %v4357_v51 = vld [vmem:[%s5741_s17 + $0x1b0] sm:$0xff]  }
 0x601   : > { %3938 = vmatpush3.bf16.msra.mxu0 %v4305_v19  ;;  %v4358_v19 = vld [vmem:[%s5741_s17 + $0x178] sm:$0xff]  }
 0x602   : > { %3939 = vmatprep.subr.bf16.mxu0 %v4307_v23  ;;  %v4359_v23 = vld [vmem:[%s5741_s17 + $0x1f8] sm:$0xff]  }
 0x605   : > { %3940 = vmatpush3.bf16.msra.mxu0 %v4309_v36  ;;  %v4360_v36 = vld [vmem:[%s5741_s17 + $0x138] sm:$0xff]  }
 0x606   : > { %3941 = vmatprep.subr.bf16.mxu0 %v4311_v39  ;;  %v4361_v39 = vld [vmem:[%s5741_s17 + $0x1b8] sm:$0xff]  }
 0x609   : > { %3942 = vmatpush3.bf16.msra.mxu0 %v4313_v43 }
 0x60a   : > { %3943 = vmatprep.subr.bf16.mxu0 %v4315_v58 }
 0x60d   : > { %3944 = vmatpush3.bf16.msra.mxu0 %v4317_v1 }
 0x60e   : > { %3945 = vmatprep.subr.bf16.mxu0 %v4319_v53 }
 0x611   : > { %3946 = vmatpush3.bf16.msra.mxu0 %v4321_v37  ;;  %v4362_v37 = vld [vmem:[%s5743_s19] sm:$0xff]  }
 0x612   : > { %3947 = vmatprep.subr.bf16.mxu0 %v4323_v41  ;;  %v4364_v41 = vld [vmem:[%s5743_s19 + $0x10] sm:$0xff]  }
 0x615   : > { %3948 = vmatpush3.bf16.msra.mxu0 %v4325_v57  ;;  %v4366_v57 = vld [vmem:[%s5743_s19 + $0x20] sm:$0xff]  }
 0x616   : > { %3949 = vmatprep.subr.bf16.mxu0 %v4327_v48  ;;  %v4368_v48 = vld [vmem:[%s5743_s19 + $0x30] sm:$0xff]  }
 0x619   : > { %3950 = vmatpush3.bf16.msra.mxu0 %v4329_v55  ;;  %v4370_v55 = vld [vmem:[%s5745_s21] sm:$0xff]  }
 0x61a   : > { %3979 = vmatprep.subr.bf16.mxu0 %v4331_v3  ;;  %v4372_v3 = vld [vmem:[%s5745_s21 + $0x10] sm:$0xff]  }
 0x6cf   : > { %v2507_v22 = vpop.f32.mrb[28].mxu0 }
 0x6d0   : > { %v2508_v34 = vadd.f32 %v3738_v18, %v2507_v22  ;;  %v4145_v49 = vpop.f32.mrb[29].mxu0  ;;  %v4373_v18 = vld [vmem:[%s5745_s21 + $0x18] sm:$0xff]   ;;  %v4374_v22 = vld [vmem:[%s5745_s21 + $0x20] sm:$0xff]  }
 0x6d1   : > { %v2510_v14 = vpop.f32.mrb[30].mxu0 }
 0x6d2   : > { %v5463_v0 = vmax.f32 %v2508_v34, 0.0  ;;  %v4146_v30 = vpop.f32.mrb[31].mxu0  ;;  %v4375_v34 = vld [vmem:[%s5745_s21 + $0x28] sm:$0xff]  }
 0x6d4   : > { %v2515_v32 = vrot.slane %v5463_v0, 1  ;;  %v2519_v12 = vrot.slane %v5463_v0, 3  ;;  %v2517_v11 = vrot.slane %v5463_v0, 2  ;;  %v2523_v28 = vrot.slane %v5463_v0, 5 }
 0x6d5   : > { %v2527_v59 = vrot.slane %v5463_v0, 7  ;;  %v2529_v31 = vpack.c.bf16 %v5463_v0, %v5463_v0  ;;  %v2521_v43 = vrot.slane %v5463_v0, 4  ;;  %v2525_v58 = vrot.slane %v5463_v0, 6  ;;  %v2665_v0 = vld [vmem:[%s5742_s18] sm:$0x1] }
 0x6d6   : > { %v2530_v61 = vpack.c.bf16 %v2515_v32, %v2515_v32  ;;  %v2532_v9 = vpack.c.bf16 %v2519_v12, %v2519_v12  ;;  %v2531_v2 = vpack.c.bf16 %v2517_v11, %v2517_v11  ;;  %v2534_v46 = vpack.c.bf16 %v2523_v28, %v2523_v28 }
 0x6d7   : > { %v2536_v24 = vpack.c.bf16 %v2527_v59, %v2527_v59  ;;  %v2533_v1 = vpack.c.bf16 %v2521_v43, %v2521_v43  ;;  %v2535_v53 = vpack.c.bf16 %v2525_v58, %v2525_v58 }
 0x6d8   : > { %3082 = vmatprep.mubr.bf16.mxu1 %v2530_v61  ;;  %3122 = vmatprep.mubr.bf16.mxu0 %v2532_v9 }
 0x6d9   : > { %3083 = vmatmul.mubr.bf16.vlgmr.msra.gmra.mrb[28].mxu1 %v2529_v31  ;;  %3123 = vmatmul.mubr.bf16.vlgmr.msra.gmra.mrb[32].mxu0 %v2531_v2 }
 0x6da   : > { %3958 = vmatpush3.bf16.msra.mxu1 %v4332_v5  ;;  %3980 = vmatpush3.bf16.msra.mxu0 %v4333_v25 }
 0x6db   : > { %3162 = vmatprep.mubr.bf16.mxu1 %v2534_v46  ;;  %3202 = vmatprep.mubr.bf16.mxu0 %v2536_v24 }
 0x6dc   : > { %3959 = vmatprep.subr.bf16.mxu1 %v4334_v15  ;;  %3981 = vmatprep.subr.bf16.mxu0 %v4335_v54 }
 0x6de   : > { %3960 = vmatpush3.bf16.msra.mxu1 %v4336_v7  ;;  %3982 = vmatpush3.bf16.msra.mxu0 %v4337_v29 }
 0x6df   : > { %3961 = vmatprep.subr.bf16.mxu1 %v4338_v33  ;;  %3983 = vmatprep.subr.bf16.mxu0 %v4339_v56 }
 0x6e2   : > { %3962 = vmatpush3.bf16.msra.mxu1 %v4340_v10  ;;  %3984 = vmatpush3.bf16.msra.mxu0 %v4341_v27 }
 0x6e3   : > { %3963 = vmatprep.subr.bf16.mxu1 %v4342_v21  ;;  %3985 = vmatprep.subr.bf16.mxu0 %v4343_v17 }
 0x6e6   : > { %3964 = vmatpush3.bf16.msra.mxu1 %v4344_v8  ;;  %3986 = vmatpush3.bf16.msra.mxu0 %v4345_v6  ;;  %v4376_v8 = vld [vmem:[%s5745_s21 + $0x30] sm:$0xff]   ;;  %v4377_v6 = vld [vmem:[%s5745_s21 + $0x38] sm:$0xff]  }
 0x6e7   : > { %3965 = vmatprep.subr.bf16.mxu1 %v4346_v13  ;;  %3987 = vmatprep.subr.bf16.mxu0 %v4347_v35  ;;  %v4378_v13 = vld [vmem:[%s5747_s23] sm:$0xff]   ;;  %v4379_v35 = vld [vmem:[%s5747_s23 + $0x8] sm:$0xff]  }
 0x6ea   : > { %3966 = vmatpush3.bf16.msra.mxu1 %v4348_v42  ;;  %3988 = vmatpush3.bf16.msra.mxu0 %v4349_v62  ;;  %v3228_v42 = vld [vmem:[%s5744_s20] sm:$0x1] }
 0x6eb   : > { %3967 = vmatprep.subr.bf16.mxu1 %v4350_v38  ;;  %3989 = vmatprep.subr.bf16.mxu0 %v4351_v26 }
 0x6ee   : > { %3968 = vmatpush3.bf16.msra.mxu1 %v4352_v47  ;;  %3990 = vmatpush3.bf16.msra.mxu0 %v4353_v40 }
 0x6ef   : > { %3969 = vmatprep.subr.bf16.mxu1 %v4354_v44  ;;  %3991 = vmatprep.subr.bf16.mxu0 %v4355_v16 }
 0x6f2   : > { %3970 = vmatpush3.bf16.msra.mxu1 %v4356_v20  ;;  %3992 = vmatpush3.bf16.msra.mxu0 %v4357_v51  ;;  %v4380_v20 = vld [vmem:[%s5747_s23 + $0x10] sm:$0xff]   ;;  %v4381_v51 = vld [vmem:[%s5747_s23 + $0x18] sm:$0xff]  }
 0x6f3   : > { %3971 = vmatprep.subr.bf16.mxu1 %v4358_v19  ;;  %3993 = vmatprep.subr.bf16.mxu0 %v4359_v23  ;;  %v4382_v19 = vld [vmem:[%s5749_s25] sm:$0xff]  }
 0x6f4   : > { %v3335_v23 = vld [vmem:[%s5746_s22] sm:$0x1] }
 0x6f6   : > { %3972 = vmatpush3.bf16.msra.mxu1 %v4360_v36  ;;  %3994 = vmatpush3.bf16.msra.mxu0 %v4361_v39 }
 0x6f7   : > { %4147 = vmatprep.subr.bf16.mxu1 %v5827_v60  ;;  %4167 = vmatprep.subr.bf16.mxu0 %v5827_v60 }
 0x6f9   : > { %3163 = vmatmul.mubr.bf16.vlgmr.msra.gmra.mrb[32].mxu1 %v2533_v1  ;;  %3203 = vmatmul.mubr.bf16.vlgmr.msra.gmra.mrb[36].mxu0 %v2535_v53 }
 0x6fa   : > { %4163 = vmatprep.mubr.msk.bf16.mxu1 %vm4497_vm4, %v5827_v60  ;;  %4183 = vmatprep.mubr.msk.bf16.mxu0 %vm4497_vm4, %v5827_v60 }
 0x6fb   : > { %4148 = vmatpush3.bf16.msra.mxu1 %v4362_v37  ;;  %4168 = vmatpush3.bf16.msra.mxu0 %v4370_v55 }
 0x6fc   : > { %4149 = vmatprep.subr.bf16.mxu1 %v5827_v60  ;;  %4169 = vmatprep.subr.bf16.mxu0 %v5827_v60 }
 0x6ff   : > { %4150 = vmatpush3.bf16.msra.mxu1 %v4363_v45  ;;  %4170 = vmatpush3.bf16.msra.mxu0 %v4371_v4  ;;  %v4383_v45 = vld [vmem:[%s5749_s25 + $0x8] sm:$0xff]   ;;  %v3508_v4 = vld [vmem:[%s5750_s26] sm:$0x1] }
 0x700   : > { %4151 = vmatprep.subr.bf16.mxu1 %v5827_v60  ;;  %4171 = vmatprep.subr.bf16.mxu0 %v5827_v60 }
 0x703   : > { %4152 = vmatpush3.bf16.msra.mxu1 %v4364_v41  ;;  %4172 = vmatpush3.bf16.msra.mxu0 %v4372_v3 }
 0x704   : > { %4153 = vmatprep.subr.bf16.mxu1 %v5827_v60  ;;  %4173 = vmatprep.subr.bf16.mxu0 %v5827_v60 }
 0x707   : > { %4154 = vmatpush3.bf16.msra.mxu1 %v4365_v50  ;;  %4174 = vmatpush3.bf16.msra.mxu0 %v4373_v18 }
 0x708   : > { %4155 = vmatprep.subr.bf16.mxu1 %v5827_v60  ;;  %4175 = vmatprep.subr.bf16.mxu0 %v5827_v60 }
 0x70b   : > { %4156 = vmatpush3.bf16.msra.mxu1 %v4366_v57  ;;  %4176 = vmatpush3.bf16.msra.mxu0 %v4374_v22 }
 0x70c   : > { %4157 = vmatprep.subr.bf16.mxu1 %v5827_v60  ;;  %4177 = vmatprep.subr.bf16.mxu0 %v5827_v60 }
 0x70f   : > { %4158 = vmatpush3.bf16.msra.mxu1 %v4367_v63  ;;  %4178 = vmatpush3.bf16.msra.mxu0 %v4375_v34 }
 0x710   : > { %4159 = vmatprep.subr.bf16.mxu1 %v5827_v60  ;;  %4179 = vmatprep.subr.bf16.mxu0 %v5827_v60 }
 0x713   : > { %4160 = vmatpush3.bf16.msra.mxu1 %v4368_v48  ;;  %4180 = vmatpush3.bf16.msra.mxu0 %v4376_v8 }
 0x714   : > { %4161 = vmatprep.subr.bf16.mxu1 %v5827_v60  ;;  %4181 = vmatprep.subr.bf16.mxu0 %v5827_v60 }
 0x717   : > { %4162 = vmatpush3.bf16.msra.mxu1 %v4369_v52  ;;  %4182 = vmatpush3.bf16.msra.mxu0 %v4377_v6 }
 0x718   : > { %4187 = vmatprep.subr.bf16.mxu1 %v5827_v60  ;;  %4199 = vmatprep.subr.bf16.mxu0 %v5827_v60 }
 0x7ac   : > { %v3929_v49 = vpop.f32.mrb[28].mxu1  ;;  %v3951_v14 = vpop.f32.mrb[32].mxu0 }
 0x7ad   : > { %v3930_v30 = vpop.f32.mrb[29].mxu1  ;;  %v3952_v32 = vpop.f32.mrb[33].mxu0 }
 0x7ae   : > { %v3931_v12 = vadd.f32 %v3930_v30, %v3929_v49  ;;  %v3953_v11 = vadd.f32 %v3952_v32, %v3951_v14  ;;  %v3932_v28 = vpop.f32.mrb[30].mxu1  ;;  %v3954_v59 = vpop.f32.mrb[34].mxu0 }
 0x7af   : > { %v3933_v61 = vpop.f32.mrb[31].mxu1  ;;  %v3955_v9 = vpop.f32.mrb[35].mxu0 }
 0x7b0   : > { %v3085_v2 = vadd.f32 %v3931_v12, %v2665_v0 }
 0x7b2   : > { %v3125_v5 = vadd.f32 %v3953_v11, %v3085_v2 }
 0x7cc   : > { %v3973_v25 = vpop.f32.mrb[32].mxu1  ;;  %v3995_v31 = vpop.f32.mrb[36].mxu0 }
 0x7cd   : > { %v3974_v15 = vpop.f32.mrb[33].mxu1  ;;  %v3996_v54 = vpop.f32.mrb[37].mxu0 }
 0x7ce   : > { %v3975_v46 = vadd.f32 %v3974_v15, %v3973_v25  ;;  %v3997_v24 = vadd.f32 %v3996_v54, %v3995_v31  ;;  %v3976_v7 = vpop.f32.mrb[34].mxu1  ;;  %v3998_v29 = vpop.f32.mrb[38].mxu0 }
 0x7cf   : > { %v3977_v33 = vpop.f32.mrb[35].mxu1  ;;  %v3999_v56 = vpop.f32.mrb[39].mxu0 }
 0x7d0   : > { %v3165_v10 = vadd.f32 %v3975_v46, %v3125_v5 }
 0x7d2   : > { %v3205_v27 = vadd.f32 %v3997_v24, %v3165_v10 }
 0x7d4   : > { %v3210_v21 = vmax.f32 %v3205_v27, 0.0 }
 0x7d6   : > { %v3211_v17 = vpack.c.bf16 %v3210_v21, %v3210_v21 }
 0x7d8   : > { %4164 = vmatmul.mubr.bf16.vlgmr.msra.gmra.mrb[36].mxu1 %v3211_v17 }
 0x7d9   : > { %4195 = vmatprep.mubr.msk.bf16.mxu1 %vm4497_vm4, %v5827_v60  ;;  %4188 = vmatpush3.bf16.msra.mxu1 %v4378_v13 }
 0x7da   : > { %4189 = vmatprep.subr.bf16.mxu1 %v5827_v60 }
 0x7dd   : > { %4190 = vmatpush3.bf16.msra.mxu1 %v4379_v35 }
 0x7de   : > { %4191 = vmatprep.subr.bf16.mxu1 %v5827_v60 }
 0x7e1   : > { %4192 = vmatpush3.bf16.msra.mxu1 %v4380_v20 }
 0x7e2   : > { %4193 = vmatprep.subr.bf16.mxu1 %v5827_v60 }
 0x7e5   : > { %4194 = vmatpush3.bf16.msra.mxu1 %v4381_v51 }
 0x8ab   : > { %v3311_v62 = vpop.f32.mrb[36].mxu1 }
 0x8ac   : > { %v3312_v38 = vadd.f32 %v3311_v62, %v3228_v42  ;;  %v4165_v26 = vpop.f32.mrb[37].mxu1 }
 0x8ad   : > { %v3314_v47 = vpop.f32.mrb[38].mxu1 }
 0x8ae   : > { %v3317_v40 = vmax.f32 %v3312_v38, 0.0  ;;  %v4166_v44 = vpop.f32.mrb[39].mxu1 }
 0x8b0   : > { %v3318_v16 = vpack.c.bf16 %v3317_v40, %v3317_v40 }
 0x8b2   : > { %4184 = vmatmul.mubr.bf16.vlgmr.msra.gmra.mrb[40].mxu0 %v3318_v16 }
 0x8b3   : > { %4203 = vmatprep.mubr.msk.bf16.mxu0 %vm4497_vm4, %v5827_v60  ;;  %4200 = vmatpush3.bf16.msra.mxu0 %v4382_v19 }
 0x8b4   : > { %4201 = vmatprep.subr.bf16.mxu0 %v5827_v60  ;;  %v3434_v60 = vld [vmem:[%s5748_s24] sm:$0x1] }
 0x8b7   : > { %4202 = vmatpush3.bf16.msra.mxu0 %v4383_v45 }
 0x985   : > { %v3418_v36 = vpop.f32.mrb[40].mxu0 }
 0x986   : > { %v3419_v39 = vadd.f32 %v3418_v36, %v3335_v23  ;;  %v4185_v43 = vpop.f32.mrb[41].mxu0 }
 0x987   : > { %v3421_v58 = vpop.f32.mrb[42].mxu0 }
 0x988   : > { %v3424_v1 = vmax.f32 %v3419_v39, 0.0  ;;  %v4186_v53 = vpop.f32.mrb[43].mxu0 }
 0x98a   : > { %v3425_v37 = vpack.c.bf16 %v3424_v1, %v3424_v1 }
 0x98c   : > { %4196 = vmatmul.mubr.msk.bf16.vlgmr.msra.gmra.mrb[40].mxu1 %vm1311_vm6, %v3425_v37 }
 0xa5f   : > { %v3496_v41 = vpop.f32.mrb[40].mxu1 }
 0xa60   : > { %v3497_v50 = vadd.f32 %v3496_v41, %v3434_v60  ;;  %v4197_v57 = vpop.f32.mrb[41].mxu1 }
 0xa61   : > { %v3499_v63 = vpop.f32.mrb[42].mxu1 }
 0xa62   : > { %v3502_v48 = vmax.f32 %v3497_v50, 0.0  ;;  %v4198_v52 = vpop.f32.mrb[43].mxu1 }
 0xa64   : > { %v3503_v55 = vpack.c.bf16 %v3502_v48, %v3502_v48 }
 0xa66   : > { %4204 = vmatmul.mubr.msk.bf16.vlgmr.msra.gmra.mrb[44].mxu0 %vm1064_vm3, %v3503_v55 }
 0xb39   : > { %v3558_v3 = vpop.f32.mrb[44].mxu0 }
 0xb3a   : > { %v3559_v18 = vadd.f32 %v3558_v3, %v3508_v4  ;;  %v4205_v22 = vpop.f32.mrb[45].mxu0 }
 0xb3b   : > { %v3561_v34 = vpop.f32.mrb[46].mxu0 }
 0xb3c   : > { %3564 = vst [vmem:[%s837_s7] sm:$0x1] %v3559_v18  ;;  %v4206_v49 = vpop.f32.mrb[47].mxu0 }
 0xb3d   : > { %4445 = shalt.err (!%p4442_p4)
}
 0xb3e   : > { %s4446_s5 = scalar_lea.hbm %s5682_s3, 16  ;;  %s4450_s6 = scalar_lea.hbm %s5751_s27, 32 }
 0xb3f   : > { %p4447_p7 = scmp.ne.s32.totalorder %s5682_s3, %s4446_s5  ;;  %p4451_p10 = scmp.lt.u32.totalorder %s5682_s3, %s5751_s27 }
 0xb40   : > { %p4452_p11 = scmp.lt.u32.totalorder %s4450_s6, %s4446_s5  ;;  %p4454_p13 = scmp.lt.u32.totalorder %s4446_s5, %s5682_s3 }
 0xb41   : > { %p4448_p8 = pnand %p4447_p7, %p4679_p5 }
 0xb42   : > { %p4453_p12 = por %p4452_p11, %p4451_p10 }
 0xb43   : > { %p4449_p9 = pneg %p4448_p8 }
 0xb44   : > { %p4455_p0 = por %p4454_p13, %p4453_p12 }
 0xb46   : > { %p4456_p1 = pnand %p4455_p0, %p4449_p9 }
 0xb48   : > { %4459 = shalt.err (!%p4456_p1)
}
 0xb49   : > { %4208 = dma.vmem_to_hbm [thread:$0]  (%p4679_p5), %s5684_s2, 16, %s5682_s3, %s3566_s29  }
 0xb4a PF: > { %s5837_s11 = sld [smem:[#allocation5_spill]]  ;;  %p4214_p2 = scmp.ge.s32.totalorder %s4494_s30, 2 }
 0xb4c   : > { %p4211_p3 = pnand %p4214_p2, %p4683_p6 }
 0xb50   : > { %s3590_s0 = sand.u32 1, %s5837_s11  }
 0xb51   : > { %s3591_s9 = scalar_lea.sflag [#allocation3], %s3590_s0 }
 0xb52   : > { %4477 = dma.done.wait (!%p4211_p3), %s3591_s9, 16  }
 0xb53   : > { %4479 = vsyncadd (!%p4211_p3), %s3591_s9, 4294967280  ;;  %s5839_s30 = sld [smem:[#allocation7_spill]]  ;;  %s5840_s5 = sld [smem:[#allocation6_spill]] }
 0xb54   : > { %s5841_s8 = sld [smem:[#allocation8_spill]]  ;;  %s5842_s7 = smov %s4486_s4 }
 0xb59   : > { %p37_p4 = scmp.ge.s32.totalorder %s5839_s30, 4   ;;  %s5843_s4 = smov %s5840_s5 }
 0xb5b   :  { %39 = sbr.rel (!%p37_p4) target bundleno = 16 (0x10), region = 169 }
 0xb62   :  { %3595 = vsyncpa [#allocation3], 1 }
 0xb63   :  { %3597 = vsyncpa [#allocation3 + $0x1], 1 }

</bundles_post_ra>
